<compile_context>
chip_gen: v5e
topology: v5e:2x2
jax: 0.10.0
libtpu: 0.0.40
codegen_flags: <defaults>
</compile_context>

<pallas_src>
import functools
import math

import jax
import jax.numpy as jnp
from jax.experimental import pallas as pl
from jax.experimental.pallas import tpu as pltpu


# ----------------------------------------------------------------------------
# Fused multi-layer encoder kernel
# ----------------------------------------------------------------------------
def _fused_encoder_kernel(
    x_ref,                      # (TB, S, D)  f32   (read only at layer 0)
    wqkv_ref, bqkv_ref,         # (1, D, 3D) bf16 / (1, 1, 3D) f32
    wo_ref, bo_ref,             # (1, D, D)  bf16 / (1, 1, D)  f32
    g1_ref, be1_ref,            # (1, 1, D)  f32
    w1_ref, b1_ref,             # (1, D, F)  bf16 / (1, 1, F)  f32
    w2_ref, b2_ref,             # (1, F, D)  bf16 / (1, 1, D)  f32
    g2_ref, be2_ref,            # (1, 1, D)  f32
    pooled_ref,                 # (TB, 1, D) f32   output (written at last layer)
    acc_ref,                    # (TB, S, D) f32   VMEM-resident activation
    *, nhead: int,
):
    layer = pl.program_id(1)
    num_layers = pl.num_programs(1)
    TB, S, D = acc_ref.shape
    hd = D // nhead
    eps = 1e-5

    # Layer 0: pull the input activation into the layer-resident accumulator.
    @pl.when(layer == 0)
    def _():
        acc_ref[...] = x_ref[...]

    xf = acc_ref[...].reshape(TB * S, D)               # f32
    xb = xf.astype(jnp.bfloat16)

    # ---- fused QKV projection: one wide MXU pass, bf16 in / f32 accumulate --
    qkv = (
        jnp.dot(xb, wqkv_ref[0], preferred_element_type=jnp.float32)
        + bqkv_ref[0]
    )                                                  # (TB*S, 3D) f32
    # 1/sqrt(hd) is pre-folded into the Q projection weights/bias.
    qb = qkv[:, 0 * D:1 * D].astype(jnp.bfloat16)
    kb = qkv[:, 1 * D:2 * D].astype(jnp.bfloat16)
    vb = qkv[:, 2 * D:3 * D].astype(jnp.bfloat16)

    # ---- attention: static loop over (row, head) via lane slices ------------
    # No head-split transposes; only one (S, S) score block is live at a time.
    ctx_rows = []
    for b in range(TB):
        r0, r1 = b * S, (b + 1) * S
        head_ctx = []
        for h in range(nhead):
            c0, c1 = h * hd, (h + 1) * hd
            q_h = qb[r0:r1, c0:c1]
            k_h = kb[r0:r1, c0:c1]
            v_h = vb[r0:r1, c0:c1]
            s = jax.lax.dot_general(
                q_h, k_h, (((1,), (1,)), ((), ())),
                preferred_element_type=jnp.float32)    # (S, S) f32
            m = jnp.max(s, axis=-1, keepdims=True)
            p = jnp.exp(s - m)
            denom = jnp.sum(p, axis=-1, keepdims=True)
            p = p * pl.reciprocal(denom, approx=True)  # EUP slot, not VALU div
            head_ctx.append(
                jnp.dot(p.astype(jnp.bfloat16), v_h,
                        preferred_element_type=jnp.float32))   # (S, hd)
        ctx_rows.append(jnp.concatenate(head_ctx, axis=-1))    # (S, D)
    ctx = ctx_rows[0] if TB == 1 else jnp.concatenate(ctx_rows, axis=0)

    attn_out = (
        jnp.dot(ctx.astype(jnp.bfloat16), wo_ref[0],
                preferred_element_type=jnp.float32)
        + bo_ref[0]
    )

    # ---- residual + LayerNorm 1 (post-norm), f32 statistics ------------------
    h1 = xf + attn_out
    mu1 = jnp.mean(h1, axis=-1, keepdims=True)
    var1 = jnp.mean((h1 - mu1) * (h1 - mu1), axis=-1, keepdims=True)
    h1 = (h1 - mu1) * jax.lax.rsqrt(var1 + eps) * g1_ref[0] + be1_ref[0]

    # ---- feed-forward: bf16 MXU, f32 accumulate, f32 ReLU --------------------
    ff = (
        jnp.dot(h1.astype(jnp.bfloat16), w1_ref[0],
                preferred_element_type=jnp.float32)
        + b1_ref[0]
    )
    ff = jnp.maximum(ff, 0.0)
    ff = (
        jnp.dot(ff.astype(jnp.bfloat16), w2_ref[0],
                preferred_element_type=jnp.float32)
        + b2_ref[0]
    )

    # ---- residual + LayerNorm 2 ----------------------------------------------
    h2 = h1 + ff
    mu2 = jnp.mean(h2, axis=-1, keepdims=True)
    var2 = jnp.mean((h2 - mu2) * (h2 - mu2), axis=-1, keepdims=True)
    out = (h2 - mu2) * jax.lax.rsqrt(var2 + eps) * g2_ref[0] + be2_ref[0]

    out3 = out.reshape(TB, S, D)
    acc_ref[...] = out3

    # ---- last-layer epilogue: fused mean-pool over the sequence --------------
    @pl.when(layer == num_layers - 1)
    def _():
        pooled_ref[...] = jnp.mean(out3, axis=1, keepdims=True)


# ----------------------------------------------------------------------------
# Wrapper
# ----------------------------------------------------------------------------
def transformer_encoder_pooled(x, stacked, *, nhead, block_b=None):
    """Run all encoder layers + mean-pool in one pallas_call.

    x:       (B, S, D) f32
    stacked: dict of per-layer weights stacked on a leading layer axis.
    returns: (B, D) f32 pooled final activations.
    """
    B, S, D = x.shape
    L = stacked["wqkv"].shape[0]
    F = stacked["w1"].shape[-1]
    if block_b is None:
        # Whole batch per tile: each layer's weights are DMA'd exactly once and
        # the grid-step count (fixed per-step overhead) is minimized.  For very
        # large B*S*D, pass a smaller divisor of B to stay inside VMEM.
        block_b = B
    assert B % block_b == 0, "batch must be divisible by block_b"
    nb = B // block_b

    x_map = lambda i, l: (i, 0, 0)      # batch-tile block, constant across layers
    w_map = lambda i, l: (l, 0, 0)      # layer block, constant across batch tiles

    in_specs = [
        pl.BlockSpec((block_b, S, D), x_map),      # x
        pl.BlockSpec((1, D, 3 * D), w_map),        # wqkv
        pl.BlockSpec((1, 1, 3 * D), w_map),        # bqkv
        pl.BlockSpec((1, D, D), w_map),            # wo
        pl.BlockSpec((1, 1, D), w_map),            # bo
        pl.BlockSpec((1, 1, D), w_map),            # ln1_g
        pl.BlockSpec((1, 1, D), w_map),            # ln1_b
        pl.BlockSpec((1, D, F), w_map),            # w1
        pl.BlockSpec((1, 1, F), w_map),            # b1
        pl.BlockSpec((1, F, D), w_map),            # w2
        pl.BlockSpec((1, 1, D), w_map),            # b2
        pl.BlockSpec((1, 1, D), w_map),            # ln2_g
        pl.BlockSpec((1, 1, D), w_map),            # ln2_b
    ]
    out_spec = pl.BlockSpec((block_b, 1, D), x_map)

    grid_spec = pltpu.PrefetchScalarGridSpec(
        num_scalar_prefetch=0,
        grid=(nb, L),                              # batch tiles x layers
        in_specs=in_specs,
        out_specs=out_spec,
        scratch_shapes=[pltpu.VMEM((block_b, S, D), jnp.float32)],
    )

    pooled = pl.pallas_call(
        functools.partial(_fused_encoder_kernel, nhead=nhead),
        out_shape=jax.ShapeDtypeStruct((B, 1, D), jnp.float32),
        grid_spec=grid_spec,
        compiler_params=pltpu.CompilerParams(
            dimension_semantics=("parallel", "arbitrary"),
            vmem_limit_bytes=32 * 1024 * 1024,
        ),
    )(
        x,
        stacked["wqkv"], stacked["bqkv"],
        stacked["wo"], stacked["bo"],
        stacked["ln1_g"], stacked["ln1_b"],
        stacked["w1"], stacked["b1"],
        stacked["w2"], stacked["b2"],
        stacked["ln2_g"], stacked["ln2_b"],
    )
    return pooled[:, 0, :]                          # (B, D)


def simple_transformer_regressor(input_ids, params, stacked, nhead, block_b=None):
    """Full forward pass. input_ids: (B, S) int32 -> (B,) float32."""
    B, S = input_ids.shape
    # Embedding gathers are data-dependent -> plain-JAX glue.
    x = jnp.take(params["token_emb"], input_ids, axis=0)        # (B, S, D)
    x = x + params["pos_emb"][:S][None, :, :]                   # broadcast over batch

    pooled = transformer_encoder_pooled(x, stacked, nhead=nhead, block_b=block_b)

    # Tiny (D -> 1) head in plain JAX (avoids a lane-width-1 Pallas store).
    out = pooled @ params["fc_w"] + params["fc_b"]              # (B, 1)
    return jnp.mean(out, axis=1)                                # (B,)


# ----------------------------------------------------------------------------
# Parameters (synthetic, deterministic) + kernel-layout preparation
# ----------------------------------------------------------------------------
def init_params(key, vocab_size, seq_len, d_model, dim_feedforward, num_layers):
    keys = jax.random.split(key, 4 + num_layers)

    def nrm(k, shape, scale=0.02):
        return (scale * jax.random.normal(k, shape)).astype(jnp.float32)

    params = {
        "token_emb": nrm(keys[0], (vocab_size, d_model)),
        # TODO(synk): AbsolutePositionalEmbedding class not provided; assumed a
        # learned (seq_len, d_model) table added per position (no sqrt scaling).
        "pos_emb": nrm(keys[1], (seq_len, d_model)),
        "fc_w": nrm(keys[2], (d_model, 1)),
        "fc_b": jnp.zeros((1, 1), jnp.float32),
        "layers": [],
    }
    for li in range(num_layers):
        lk = jax.random.split(keys[4 + li], 8)
        params["layers"].append({
            "wq": nrm(lk[0], (d_model, d_model)),
            "bq": jnp.zeros((1, d_model), jnp.float32),
            "wk": nrm(lk[1], (d_model, d_model)),
            "bk": jnp.zeros((1, d_model), jnp.float32),
            "wv": nrm(lk[2], (d_model, d_model)),
            "bv": jnp.zeros((1, d_model), jnp.float32),
            "wo": nrm(lk[3], (d_model, d_model)),
            "bo": jnp.zeros((1, d_model), jnp.float32),
            "ln1_g": jnp.ones((1, d_model), jnp.float32),
            "ln1_b": jnp.zeros((1, d_model), jnp.float32),
            "w1": nrm(lk[4], (d_model, dim_feedforward)),
            "b1": jnp.zeros((1, dim_feedforward), jnp.float32),
            "w2": nrm(lk[5], (dim_feedforward, d_model)),
            "b2": jnp.zeros((1, d_model), jnp.float32),
            "ln2_g": jnp.ones((1, d_model), jnp.float32),
            "ln2_b": jnp.zeros((1, d_model), jnp.float32),
        })
    return params


def prepare_stacked_params(layers, nhead):
    """Stack per-layer weights on a leading layer axis, fuse QKV, fold the
    attention scale into Q, and cast matmul weights to bf16 (biases/LN in f32)."""
    d_model = layers[0]["wq"].shape[0]
    hd = d_model // nhead
    scale = 1.0 / math.sqrt(hd)

    def stack(fn, dtype=jnp.float32):
        return jnp.stack([fn(p) for p in layers]).astype(dtype)

    return {
        "wqkv": stack(lambda p: jnp.concatenate(
            [p["wq"] * scale, p["wk"], p["wv"]], axis=1), jnp.bfloat16),
        "bqkv": stack(lambda p: jnp.concatenate(
            [p["bq"] * scale, p["bk"], p["bv"]], axis=1)),
        "wo": stack(lambda p: p["wo"], jnp.bfloat16),
        "bo": stack(lambda p: p["bo"]),
        "ln1_g": stack(lambda p: p["ln1_g"]),
        "ln1_b": stack(lambda p: p["ln1_b"]),
        "w1": stack(lambda p: p["w1"], jnp.bfloat16),
        "b1": stack(lambda p: p["b1"]),
        "w2": stack(lambda p: p["w2"], jnp.bfloat16),
        "b2": stack(lambda p: p["b2"]),
        "ln2_g": stack(lambda p: p["ln2_g"]),
        "ln2_b": stack(lambda p: p["ln2_b"]),
    }


# ----------------------------------------------------------------------------
# Pure-JAX f32 reference (PyTorch-equivalent math) for a loose sanity check
# ----------------------------------------------------------------------------
def _reference_forward(input_ids, params, nhead):
    S = input_ids.shape[1]
    x = jnp.take(params["token_emb"], input_ids, axis=0)
    x = x + params["pos_emb"][:S][None, :, :]
    B, S, D = x.shape
    hd = D // nhead
    for p in params["layers"]:
        xf = x.reshape(B * S, D)
        q = (xf @ p["wq"] + p["bq"]).reshape(B, S, nhead, hd)
        k = (xf @ p["wk"] + p["bk"]).reshape(B, S, nhead, hd)
        v = (xf @ p["wv"] + p["bv"]).reshape(B, S, nhead, hd)
        scores = jnp.einsum("bqhd,bkhd->bhqk", q, k) / math.sqrt(hd)
        attn = jax.nn.softmax(scores, axis=-1)
        ctx = jnp.einsum("bhqk,bkhd->bqhd", attn, v).reshape(B * S, D)
        a = ctx @ p["wo"] + p["bo"]
        h = xf + a
        mu = h.mean(-1, keepdims=True)
        var = ((h - mu) ** 2).mean(-1, keepdims=True)
        h1 = (h - mu) / jnp.sqrt(var + 1e-5) * p["ln1_g"] + p["ln1_b"]
        ff = jnp.maximum(h1 @ p["w1"] + p["b1"], 0.0) @ p["w2"] + p["b2"]
        h2 = h1 + ff
        mu2 = h2.mean(-1, keepdims=True)
        var2 = ((h2 - mu2) ** 2).mean(-1, keepdims=True)
        x = ((h2 - mu2) / jnp.sqrt(var2 + 1e-5) * p["ln2_g"]
             + p["ln2_b"]).reshape(B, S, D)
    pooled = x.mean(axis=1)
    out = pooled @ params["fc_w"] + params["fc_b"]
    return out.mean(axis=1)


# ----------------------------------------------------------------------------
if __name__ == "__main__":
    vocab_size = 100
    seq_len = 8
    d_model = 32
    nhead = 4
    num_encoder_layers = 2
    dim_feedforward = 64
    # dropout = 0.1  # inference mode: dropout is identity, intentionally omitted.
    batch = 2

    key = jax.random.PRNGKey(0)
    k_ids, k_params = jax.random.split(key)

    input_ids = jax.random.randint(
        k_ids, (batch, seq_len), minval=0, maxval=vocab_size, dtype=jnp.int32
    )
    params = init_params(
        k_params, vocab_size, seq_len, d_model, dim_feedforward, num_encoder_layers
    )
    stacked = prepare_stacked_params(params["layers"], nhead)

    # block_b=None -> whole batch per tile (weights streamed once per layer).
    out = simple_transformer_regressor(input_ids, params, stacked, nhead)
    out = jax.block_until_ready(out)

    assert out.shape == (batch,), out.shape
    assert out.dtype == jnp.float32
    assert bool(jnp.all(jnp.isfinite(out)))

    # Loose parity check vs. f32 reference (kernel uses bf16 MXU inputs).
    ref = _reference_forward(input_ids, params, nhead)
    max_err = float(jnp.max(jnp.abs(out - ref)))
    assert max_err < 5e-2, f"max abs err {max_err}"

    print("KERNEL_OK")
</pallas_src>

<mosaic_0001>
module attributes {stable_mosaic.version = 11 : i64} {
  func.func @_fused_encoder_kernel(%arg0: i32, %arg1: i32, %arg2: memref<2x8x32xf32, #tpu.memory_space<vmem>>, %arg3: memref<1x32x96xbf16, #tpu.memory_space<vmem>>, %arg4: memref<1x1x96xf32, #tpu.memory_space<vmem>>, %arg5: memref<1x32x32xbf16, #tpu.memory_space<vmem>>, %arg6: memref<1x1x32xf32, #tpu.memory_space<vmem>>, %arg7: memref<1x1x32xf32, #tpu.memory_space<vmem>>, %arg8: memref<1x1x32xf32, #tpu.memory_space<vmem>>, %arg9: memref<1x32x64xbf16, #tpu.memory_space<vmem>>, %arg10: memref<1x1x64xf32, #tpu.memory_space<vmem>>, %arg11: memref<1x64x32xbf16, #tpu.memory_space<vmem>>, %arg12: memref<1x1x32xf32, #tpu.memory_space<vmem>>, %arg13: memref<1x1x32xf32, #tpu.memory_space<vmem>>, %arg14: memref<1x1x32xf32, #tpu.memory_space<vmem>>, %arg15: memref<2x1x32xf32, #tpu.memory_space<vmem>>, %arg16: memref<2x8x32xf32, #tpu.memory_space<vmem>>) attributes {dimension_semantics = [#tpu.dimension_semantics<parallel>, #tpu.dimension_semantics<arbitrary>], iteration_bounds = array<i64: 1, 2>, scalar_prefetch = 0 : i64, scratch_operands = 1 : i64, tpu.core_type = #tpu.core_type<tc>, window_params = [{transform_indices = @transform_0, window_bounds = array<i64: 2, 8, 32>}, {transform_indices = @transform_1, window_bounds = array<i64: 1, 32, 96>}, {transform_indices = @transform_2, window_bounds = array<i64: 1, 1, 96>}, {transform_indices = @transform_3, window_bounds = array<i64: 1, 32, 32>}, {transform_indices = @transform_4, window_bounds = array<i64: 1, 1, 32>}, {transform_indices = @transform_5, window_bounds = array<i64: 1, 1, 32>}, {transform_indices = @transform_6, window_bounds = array<i64: 1, 1, 32>}, {transform_indices = @transform_7, window_bounds = array<i64: 1, 32, 64>}, {transform_indices = @transform_8, window_bounds = array<i64: 1, 1, 64>}, {transform_indices = @transform_9, window_bounds = array<i64: 1, 64, 32>}, {transform_indices = @transform_10, window_bounds = array<i64: 1, 1, 32>}, {transform_indices = @transform_11, window_bounds = array<i64: 1, 1, 32>}, {transform_indices = @transform_12, window_bounds = array<i64: 1, 1, 32>}, {transform_indices = @transform_13, window_bounds = array<i64: 2, 1, 32>}]} {
    %c0_i32 = arith.constant 0 : i32
    %0 = arith.cmpi eq, %arg1, %c0_i32 : i32
    %1 = arith.extui %0 : i1 to i32
    %c0_i32_0 = arith.constant 0 : i32
    %2 = arith.cmpi ne, %1, %c0_i32_0 : i32
    scf.if %2 {
      %c0_89 = arith.constant 0 : index
      %c0_90 = arith.constant 0 : index
      %c0_91 = arith.constant 0 : index
      %239 = vector.load %arg2[%c0_89, %c0_90, %c0_91] : memref<2x8x32xf32, #tpu.memory_space<vmem>>, vector<2x8x32xf32>
      %c0_92 = arith.constant 0 : index
      %c0_93 = arith.constant 0 : index
      %c0_94 = arith.constant 0 : index
      %240 = vector.load %arg16[%c0_92, %c0_93, %c0_94] : memref<2x8x32xf32, #tpu.memory_space<vmem>>, vector<2x8x32xf32>
      tpu.vector_store %arg16[%c0_92, %c0_93, %c0_94], %239 {strides = array<i32>} : memref<2x8x32xf32, #tpu.memory_space<vmem>>, vector<2x8x32xf32>,
    } else {
    }
    %c0 = arith.constant 0 : index
    %c0_1 = arith.constant 0 : index
    %c0_2 = arith.constant 0 : index
    %3 = vector.load %arg16[%c0, %c0_1, %c0_2] : memref<2x8x32xf32, #tpu.memory_space<vmem>>, vector<2x8x32xf32>
    %4 = vector.shape_cast %3 : vector<2x8x32xf32> to vector<16x32xf32>
    %5 = arith.truncf %4 : vector<16x32xf32> to vector<16x32xbf16>
    %c0_3 = arith.constant 0 : index
    %c0_4 = arith.constant 0 : index
    %c0_5 = arith.constant 0 : index
    %6 = vector.load %arg3[%c0_3, %c0_4, %c0_5] : memref<1x32x96xbf16, #tpu.memory_space<vmem>>, vector<1x32x96xbf16>
    %7 = vector.shape_cast %6 : vector<1x32x96xbf16> to vector<32x96xbf16>
    %cst = arith.constant dense<0.000000e+00> : vector<16x96xf32>
    %8 = tpu.matmul %5, %7, %cst {dimension_numbers = #tpu.dot_dimension_numbers<[1], [0], [0], [1], [0, 0, 1, 1], [], []>} : vector<16x32xbf16>, vector<32x96xbf16>, vector<16x96xf32> -> vector<16x96xf32>
    %c0_6 = arith.constant 0 : index
    %c0_7 = arith.constant 0 : index
    %c0_8 = arith.constant 0 : index
    %9 = vector.load %arg4[%c0_6, %c0_7, %c0_8] : memref<1x1x96xf32, #tpu.memory_space<vmem>>, vector<1x1x96xf32>
    %10 = vector.shape_cast %9 : vector<1x1x96xf32> to vector<1x96xf32>
    %11 = vector.broadcast %10 : vector<1x96xf32> to vector<16x96xf32>
    %12 = arith.addf %8, %11 : vector<16x96xf32>
    %13 = vector.extract_strided_slice %12 {offsets = [0, 0], sizes = [16, 32], strides = [1, 1]} : vector<16x96xf32> to vector<16x32xf32>
    %14 = arith.truncf %13 : vector<16x32xf32> to vector<16x32xbf16>
    %15 = vector.extract_strided_slice %12 {offsets = [0, 32], sizes = [16, 32], strides = [1, 1]} : vector<16x96xf32> to vector<16x32xf32>
    %16 = arith.truncf %15 : vector<16x32xf32> to vector<16x32xbf16>
    %17 = vector.extract_strided_slice %12 {offsets = [0, 64], sizes = [16, 32], strides = [1, 1]} : vector<16x96xf32> to vector<16x32xf32>
    %18 = arith.truncf %17 : vector<16x32xf32> to vector<16x32xbf16>
    %19 = vector.extract_strided_slice %14 {offsets = [0, 0], sizes = [8, 8], strides = [1, 1]} : vector<16x32xbf16> to vector<8x8xbf16>
    %20 = vector.extract_strided_slice %16 {offsets = [0, 0], sizes = [8, 8], strides = [1, 1]} : vector<16x32xbf16> to vector<8x8xbf16>
    %21 = vector.extract_strided_slice %18 {offsets = [0, 0], sizes = [8, 8], strides = [1, 1]} : vector<16x32xbf16> to vector<8x8xbf16>
    %cst_9 = arith.constant dense<0.000000e+00> : vector<8x8xf32>
    %22 = tpu.matmul %19, %20, %cst_9 {dimension_numbers = #tpu.dot_dimension_numbers<[1], [1], [0], [0], [0, 0, 1, 0], [], []>} : vector<8x8xbf16>, vector<8x8xbf16>, vector<8x8xf32> -> vector<8x8xf32>
    %cst_10 = arith.constant dense<0xFF800000> : vector<8xf32>
    %23 = vector.multi_reduction <maximumf>, %22, %cst_10 [1] : vector<8x8xf32> to vector<8xf32>
    %24 = vector.shape_cast %23 : vector<8xf32> to vector<8x1xf32>
    %25 = vector.broadcast %24 : vector<8x1xf32> to vector<8x8xf32>
    %26 = arith.subf %22, %25 : vector<8x8xf32>
    %27 = math.exp %26 : vector<8x8xf32>
    %cst_11 = arith.constant dense<0.000000e+00> : vector<8xf32>
    %28 = vector.multi_reduction <add>, %27, %cst_11 [1] : vector<8x8xf32> to vector<8xf32>
    %29 = vector.shape_cast %28 : vector<8xf32> to vector<8x1xf32>
    %30 = tpu.reciprocal %29 {approx = true} : vector<8x1xf32> -> vector<8x1xf32>
    %31 = vector.broadcast %30 : vector<8x1xf32> to vector<8x8xf32>
    %32 = arith.mulf %27, %31 : vector<8x8xf32>
    %33 = arith.truncf %32 : vector<8x8xf32> to vector<8x8xbf16>
    %cst_12 = arith.constant dense<0.000000e+00> : vector<8x8xf32>
    %34 = tpu.matmul %33, %21, %cst_12 {dimension_numbers = #tpu.dot_dimension_numbers<[1], [0], [0], [1], [0, 0, 1, 1], [], []>} : vector<8x8xbf16>, vector<8x8xbf16>, vector<8x8xf32> -> vector<8x8xf32>
    %35 = vector.extract_strided_slice %14 {offsets = [0, 8], sizes = [8, 8], strides = [1, 1]} : vector<16x32xbf16> to vector<8x8xbf16>
    %36 = vector.extract_strided_slice %16 {offsets = [0, 8], sizes = [8, 8], strides = [1, 1]} : vector<16x32xbf16> to vector<8x8xbf16>
    %37 = vector.extract_strided_slice %18 {offsets = [0, 8], sizes = [8, 8], strides = [1, 1]} : vector<16x32xbf16> to vector<8x8xbf16>
    %cst_13 = arith.constant dense<0.000000e+00> : vector<8x8xf32>
    %38 = tpu.matmul %35, %36, %cst_13 {dimension_numbers = #tpu.dot_dimension_numbers<[1], [1], [0], [0], [0, 0, 1, 0], [], []>} : vector<8x8xbf16>, vector<8x8xbf16>, vector<8x8xf32> -> vector<8x8xf32>
    %cst_14 = arith.constant dense<0xFF800000> : vector<8xf32>
    %39 = vector.multi_reduction <maximumf>, %38, %cst_14 [1] : vector<8x8xf32> to vector<8xf32>
    %40 = vector.shape_cast %39 : vector<8xf32> to vector<8x1xf32>
    %41 = vector.broadcast %40 : vector<8x1xf32> to vector<8x8xf32>
    %42 = arith.subf %38, %41 : vector<8x8xf32>
    %43 = math.exp %42 : vector<8x8xf32>
    %cst_15 = arith.constant dense<0.000000e+00> : vector<8xf32>
    %44 = vector.multi_reduction <add>, %43, %cst_15 [1] : vector<8x8xf32> to vector<8xf32>
    %45 = vector.shape_cast %44 : vector<8xf32> to vector<8x1xf32>
    %46 = tpu.reciprocal %45 {approx = true} : vector<8x1xf32> -> vector<8x1xf32>
    %47 = vector.broadcast %46 : vector<8x1xf32> to vector<8x8xf32>
    %48 = arith.mulf %43, %47 : vector<8x8xf32>
    %49 = arith.truncf %48 : vector<8x8xf32> to vector<8x8xbf16>
    %cst_16 = arith.constant dense<0.000000e+00> : vector<8x8xf32>
    %50 = tpu.matmul %49, %37, %cst_16 {dimension_numbers = #tpu.dot_dimension_numbers<[1], [0], [0], [1], [0, 0, 1, 1], [], []>} : vector<8x8xbf16>, vector<8x8xbf16>, vector<8x8xf32> -> vector<8x8xf32>
    %51 = vector.extract_strided_slice %14 {offsets = [0, 16], sizes = [8, 8], strides = [1, 1]} : vector<16x32xbf16> to vector<8x8xbf16>
    %52 = vector.extract_strided_slice %16 {offsets = [0, 16], sizes = [8, 8], strides = [1, 1]} : vector<16x32xbf16> to vector<8x8xbf16>
    %53 = vector.extract_strided_slice %18 {offsets = [0, 16], sizes = [8, 8], strides = [1, 1]} : vector<16x32xbf16> to vector<8x8xbf16>
    %cst_17 = arith.constant dense<0.000000e+00> : vector<8x8xf32>
    %54 = tpu.matmul %51, %52, %cst_17 {dimension_numbers = #tpu.dot_dimension_numbers<[1], [1], [0], [0], [0, 0, 1, 0], [], []>} : vector<8x8xbf16>, vector<8x8xbf16>, vector<8x8xf32> -> vector<8x8xf32>
    %cst_18 = arith.constant dense<0xFF800000> : vector<8xf32>
    %55 = vector.multi_reduction <maximumf>, %54, %cst_18 [1] : vector<8x8xf32> to vector<8xf32>
    %56 = vector.shape_cast %55 : vector<8xf32> to vector<8x1xf32>
    %57 = vector.broadcast %56 : vector<8x1xf32> to vector<8x8xf32>
    %58 = arith.subf %54, %57 : vector<8x8xf32>
    %59 = math.exp %58 : vector<8x8xf32>
    %cst_19 = arith.constant dense<0.000000e+00> : vector<8xf32>
    %60 = vector.multi_reduction <add>, %59, %cst_19 [1] : vector<8x8xf32> to vector<8xf32>
    %61 = vector.shape_cast %60 : vector<8xf32> to vector<8x1xf32>
    %62 = tpu.reciprocal %61 {approx = true} : vector<8x1xf32> -> vector<8x1xf32>
    %63 = vector.broadcast %62 : vector<8x1xf32> to vector<8x8xf32>
    %64 = arith.mulf %59, %63 : vector<8x8xf32>
    %65 = arith.truncf %64 : vector<8x8xf32> to vector<8x8xbf16>
    %cst_20 = arith.constant dense<0.000000e+00> : vector<8x8xf32>
    %66 = tpu.matmul %65, %53, %cst_20 {dimension_numbers = #tpu.dot_dimension_numbers<[1], [0], [0], [1], [0, 0, 1, 1], [], []>} : vector<8x8xbf16>, vector<8x8xbf16>, vector<8x8xf32> -> vector<8x8xf32>
    %67 = vector.extract_strided_slice %14 {offsets = [0, 24], sizes = [8, 8], strides = [1, 1]} : vector<16x32xbf16> to vector<8x8xbf16>
    %68 = vector.extract_strided_slice %16 {offsets = [0, 24], sizes = [8, 8], strides = [1, 1]} : vector<16x32xbf16> to vector<8x8xbf16>
    %69 = vector.extract_strided_slice %18 {offsets = [0, 24], sizes = [8, 8], strides = [1, 1]} : vector<16x32xbf16> to vector<8x8xbf16>
    %cst_21 = arith.constant dense<0.000000e+00> : vector<8x8xf32>
    %70 = tpu.matmul %67, %68, %cst_21 {dimension_numbers = #tpu.dot_dimension_numbers<[1], [1], [0], [0], [0, 0, 1, 0], [], []>} : vector<8x8xbf16>, vector<8x8xbf16>, vector<8x8xf32> -> vector<8x8xf32>
    %cst_22 = arith.constant dense<0xFF800000> : vector<8xf32>
    %71 = vector.multi_reduction <maximumf>, %70, %cst_22 [1] : vector<8x8xf32> to vector<8xf32>
    %72 = vector.shape_cast %71 : vector<8xf32> to vector<8x1xf32>
    %73 = vector.broadcast %72 : vector<8x1xf32> to vector<8x8xf32>
    %74 = arith.subf %70, %73 : vector<8x8xf32>
    %75 = math.exp %74 : vector<8x8xf32>
    %cst_23 = arith.constant dense<0.000000e+00> : vector<8xf32>
    %76 = vector.multi_reduction <add>, %75, %cst_23 [1] : vector<8x8xf32> to vector<8xf32>
    %77 = vector.shape_cast %76 : vector<8xf32> to vector<8x1xf32>
    %78 = tpu.reciprocal %77 {approx = true} : vector<8x1xf32> -> vector<8x1xf32>
    %79 = vector.broadcast %78 : vector<8x1xf32> to vector<8x8xf32>
    %80 = arith.mulf %75, %79 : vector<8x8xf32>
    %81 = arith.truncf %80 : vector<8x8xf32> to vector<8x8xbf16>
    %cst_24 = arith.constant dense<0.000000e+00> : vector<8x8xf32>
    %82 = tpu.matmul %81, %69, %cst_24 {dimension_numbers = #tpu.dot_dimension_numbers<[1], [0], [0], [1], [0, 0, 1, 1], [], []>} : vector<8x8xbf16>, vector<8x8xbf16>, vector<8x8xf32> -> vector<8x8xf32>
    %83 = tpu.concatenate %34, %50, %66, %82 in 1 : vector<8x8xf32>, vector<8x8xf32>, vector<8x8xf32>, vector<8x8xf32> -> vector<8x32xf32>
    %84 = vector.extract_strided_slice %14 {offsets = [8, 0], sizes = [8, 8], strides = [1, 1]} : vector<16x32xbf16> to vector<8x8xbf16>
    %85 = vector.extract_strided_slice %16 {offsets = [8, 0], sizes = [8, 8], strides = [1, 1]} : vector<16x32xbf16> to vector<8x8xbf16>
    %86 = vector.extract_strided_slice %18 {offsets = [8, 0], sizes = [8, 8], strides = [1, 1]} : vector<16x32xbf16> to vector<8x8xbf16>
    %cst_25 = arith.constant dense<0.000000e+00> : vector<8x8xf32>
    %87 = tpu.matmul %84, %85, %cst_25 {dimension_numbers = #tpu.dot_dimension_numbers<[1], [1], [0], [0], [0, 0, 1, 0], [], []>} : vector<8x8xbf16>, vector<8x8xbf16>, vector<8x8xf32> -> vector<8x8xf32>
    %cst_26 = arith.constant dense<0xFF800000> : vector<8xf32>
    %88 = vector.multi_reduction <maximumf>, %87, %cst_26 [1] : vector<8x8xf32> to vector<8xf32>
    %89 = vector.shape_cast %88 : vector<8xf32> to vector<8x1xf32>
    %90 = vector.broadcast %89 : vector<8x1xf32> to vector<8x8xf32>
    %91 = arith.subf %87, %90 : vector<8x8xf32>
    %92 = math.exp %91 : vector<8x8xf32>
    %cst_27 = arith.constant dense<0.000000e+00> : vector<8xf32>
    %93 = vector.multi_reduction <add>, %92, %cst_27 [1] : vector<8x8xf32> to vector<8xf32>
    %94 = vector.shape_cast %93 : vector<8xf32> to vector<8x1xf32>
    %95 = tpu.reciprocal %94 {approx = true} : vector<8x1xf32> -> vector<8x1xf32>
    %96 = vector.broadcast %95 : vector<8x1xf32> to vector<8x8xf32>
    %97 = arith.mulf %92, %96 : vector<8x8xf32>
    %98 = arith.truncf %97 : vector<8x8xf32> to vector<8x8xbf16>
    %cst_28 = arith.constant dense<0.000000e+00> : vector<8x8xf32>
    %99 = tpu.matmul %98, %86, %cst_28 {dimension_numbers = #tpu.dot_dimension_numbers<[1], [0], [0], [1], [0, 0, 1, 1], [], []>} : vector<8x8xbf16>, vector<8x8xbf16>, vector<8x8xf32> -> vector<8x8xf32>
    %100 = vector.extract_strided_slice %14 {offsets = [8, 8], sizes = [8, 8], strides = [1, 1]} : vector<16x32xbf16> to vector<8x8xbf16>
    %101 = vector.extract_strided_slice %16 {offsets = [8, 8], sizes = [8, 8], strides = [1, 1]} : vector<16x32xbf16> to vector<8x8xbf16>
    %102 = vector.extract_strided_slice %18 {offsets = [8, 8], sizes = [8, 8], strides = [1, 1]} : vector<16x32xbf16> to vector<8x8xbf16>
    %cst_29 = arith.constant dense<0.000000e+00> : vector<8x8xf32>
    %103 = tpu.matmul %100, %101, %cst_29 {dimension_numbers = #tpu.dot_dimension_numbers<[1], [1], [0], [0], [0, 0, 1, 0], [], []>} : vector<8x8xbf16>, vector<8x8xbf16>, vector<8x8xf32> -> vector<8x8xf32>
    %cst_30 = arith.constant dense<0xFF800000> : vector<8xf32>
    %104 = vector.multi_reduction <maximumf>, %103, %cst_30 [1] : vector<8x8xf32> to vector<8xf32>
    %105 = vector.shape_cast %104 : vector<8xf32> to vector<8x1xf32>
    %106 = vector.broadcast %105 : vector<8x1xf32> to vector<8x8xf32>
    %107 = arith.subf %103, %106 : vector<8x8xf32>
    %108 = math.exp %107 : vector<8x8xf32>
    %cst_31 = arith.constant dense<0.000000e+00> : vector<8xf32>
    %109 = vector.multi_reduction <add>, %108, %cst_31 [1] : vector<8x8xf32> to vector<8xf32>
    %110 = vector.shape_cast %109 : vector<8xf32> to vector<8x1xf32>
    %111 = tpu.reciprocal %110 {approx = true} : vector<8x1xf32> -> vector<8x1xf32>
    %112 = vector.broadcast %111 : vector<8x1xf32> to vector<8x8xf32>
    %113 = arith.mulf %108, %112 : vector<8x8xf32>
    %114 = arith.truncf %113 : vector<8x8xf32> to vector<8x8xbf16>
    %cst_32 = arith.constant dense<0.000000e+00> : vector<8x8xf32>
    %115 = tpu.matmul %114, %102, %cst_32 {dimension_numbers = #tpu.dot_dimension_numbers<[1], [0], [0], [1], [0, 0, 1, 1], [], []>} : vector<8x8xbf16>, vector<8x8xbf16>, vector<8x8xf32> -> vector<8x8xf32>
    %116 = vector.extract_strided_slice %14 {offsets = [8, 16], sizes = [8, 8], strides = [1, 1]} : vector<16x32xbf16> to vector<8x8xbf16>
    %117 = vector.extract_strided_slice %16 {offsets = [8, 16], sizes = [8, 8], strides = [1, 1]} : vector<16x32xbf16> to vector<8x8xbf16>
    %118 = vector.extract_strided_slice %18 {offsets = [8, 16], sizes = [8, 8], strides = [1, 1]} : vector<16x32xbf16> to vector<8x8xbf16>
    %cst_33 = arith.constant dense<0.000000e+00> : vector<8x8xf32>
    %119 = tpu.matmul %116, %117, %cst_33 {dimension_numbers = #tpu.dot_dimension_numbers<[1], [1], [0], [0], [0, 0, 1, 0], [], []>} : vector<8x8xbf16>, vector<8x8xbf16>, vector<8x8xf32> -> vector<8x8xf32>
    %cst_34 = arith.constant dense<0xFF800000> : vector<8xf32>
    %120 = vector.multi_reduction <maximumf>, %119, %cst_34 [1] : vector<8x8xf32> to vector<8xf32>
    %121 = vector.shape_cast %120 : vector<8xf32> to vector<8x1xf32>
    %122 = vector.broadcast %121 : vector<8x1xf32> to vector<8x8xf32>
    %123 = arith.subf %119, %122 : vector<8x8xf32>
    %124 = math.exp %123 : vector<8x8xf32>
    %cst_35 = arith.constant dense<0.000000e+00> : vector<8xf32>
    %125 = vector.multi_reduction <add>, %124, %cst_35 [1] : vector<8x8xf32> to vector<8xf32>
    %126 = vector.shape_cast %125 : vector<8xf32> to vector<8x1xf32>
    %127 = tpu.reciprocal %126 {approx = true} : vector<8x1xf32> -> vector<8x1xf32>
    %128 = vector.broadcast %127 : vector<8x1xf32> to vector<8x8xf32>
    %129 = arith.mulf %124, %128 : vector<8x8xf32>
    %130 = arith.truncf %129 : vector<8x8xf32> to vector<8x8xbf16>
    %cst_36 = arith.constant dense<0.000000e+00> : vector<8x8xf32>
    %131 = tpu.matmul %130, %118, %cst_36 {dimension_numbers = #tpu.dot_dimension_numbers<[1], [0], [0], [1], [0, 0, 1, 1], [], []>} : vector<8x8xbf16>, vector<8x8xbf16>, vector<8x8xf32> -> vector<8x8xf32>
    %132 = vector.extract_strided_slice %14 {offsets = [8, 24], sizes = [8, 8], strides = [1, 1]} : vector<16x32xbf16> to vector<8x8xbf16>
    %133 = vector.extract_strided_slice %16 {offsets = [8, 24], sizes = [8, 8], strides = [1, 1]} : vector<16x32xbf16> to vector<8x8xbf16>
    %134 = vector.extract_strided_slice %18 {offsets = [8, 24], sizes = [8, 8], strides = [1, 1]} : vector<16x32xbf16> to vector<8x8xbf16>
    %cst_37 = arith.constant dense<0.000000e+00> : vector<8x8xf32>
    %135 = tpu.matmul %132, %133, %cst_37 {dimension_numbers = #tpu.dot_dimension_numbers<[1], [1], [0], [0], [0, 0, 1, 0], [], []>} : vector<8x8xbf16>, vector<8x8xbf16>, vector<8x8xf32> -> vector<8x8xf32>
    %cst_38 = arith.constant dense<0xFF800000> : vector<8xf32>
    %136 = vector.multi_reduction <maximumf>, %135, %cst_38 [1] : vector<8x8xf32> to vector<8xf32>
    %137 = vector.shape_cast %136 : vector<8xf32> to vector<8x1xf32>
    %138 = vector.broadcast %137 : vector<8x1xf32> to vector<8x8xf32>
    %139 = arith.subf %135, %138 : vector<8x8xf32>
    %140 = math.exp %139 : vector<8x8xf32>
    %cst_39 = arith.constant dense<0.000000e+00> : vector<8xf32>
    %141 = vector.multi_reduction <add>, %140, %cst_39 [1] : vector<8x8xf32> to vector<8xf32>
    %142 = vector.shape_cast %141 : vector<8xf32> to vector<8x1xf32>
    %143 = tpu.reciprocal %142 {approx = true} : vector<8x1xf32> -> vector<8x1xf32>
    %144 = vector.broadcast %143 : vector<8x1xf32> to vector<8x8xf32>
    %145 = arith.mulf %140, %144 : vector<8x8xf32>
    %146 = arith.truncf %145 : vector<8x8xf32> to vector<8x8xbf16>
    %cst_40 = arith.constant dense<0.000000e+00> : vector<8x8xf32>
    %147 = tpu.matmul %146, %134, %cst_40 {dimension_numbers = #tpu.dot_dimension_numbers<[1], [0], [0], [1], [0, 0, 1, 1], [], []>} : vector<8x8xbf16>, vector<8x8xbf16>, vector<8x8xf32> -> vector<8x8xf32>
    %148 = tpu.concatenate %99, %115, %131, %147 in 1 : vector<8x8xf32>, vector<8x8xf32>, vector<8x8xf32>, vector<8x8xf32> -> vector<8x32xf32>
    %149 = tpu.concatenate %83, %148 in 0 : vector<8x32xf32>, vector<8x32xf32> -> vector<16x32xf32>
    %150 = arith.truncf %149 : vector<16x32xf32> to vector<16x32xbf16>
    %c0_41 = arith.constant 0 : index
    %c0_42 = arith.constant 0 : index
    %c0_43 = arith.constant 0 : index
    %151 = vector.load %arg5[%c0_41, %c0_42, %c0_43] : memref<1x32x32xbf16, #tpu.memory_space<vmem>>, vector<1x32x32xbf16>
    %152 = vector.shape_cast %151 : vector<1x32x32xbf16> to vector<32x32xbf16>
    %cst_44 = arith.constant dense<0.000000e+00> : vector<16x32xf32>
    %153 = tpu.matmul %150, %152, %cst_44 {dimension_numbers = #tpu.dot_dimension_numbers<[1], [0], [0], [1], [0, 0, 1, 1], [], []>} : vector<16x32xbf16>, vector<32x32xbf16>, vector<16x32xf32> -> vector<16x32xf32>
    %c0_45 = arith.constant 0 : index
    %c0_46 = arith.constant 0 : index
    %c0_47 = arith.constant 0 : index
    %154 = vector.load %arg6[%c0_45, %c0_46, %c0_47] : memref<1x1x32xf32, #tpu.memory_space<vmem>>, vector<1x1x32xf32>
    %155 = vector.shape_cast %154 : vector<1x1x32xf32> to vector<1x32xf32>
    %156 = vector.broadcast %155 : vector<1x32xf32> to vector<16x32xf32>
    %157 = arith.addf %153, %156 : vector<16x32xf32>
    %158 = arith.addf %4, %157 : vector<16x32xf32>
    %cst_48 = arith.constant dense<0.000000e+00> : vector<16xf32>
    %159 = vector.multi_reduction <add>, %158, %cst_48 [1] : vector<16x32xf32> to vector<16xf32>
    %160 = vector.shape_cast %159 : vector<16xf32> to vector<16x1xf32>
    %cst_49 = arith.constant 3.200000e+01 : f32
    %161 = vector.broadcast %cst_49 : f32 to vector<16x1xf32>
    %162 = arith.divf %160, %161 : vector<16x1xf32>
    %163 = vector.broadcast %162 : vector<16x1xf32> to vector<16x32xf32>
    %164 = arith.subf %158, %163 : vector<16x32xf32>
    %165 = vector.broadcast %162 : vector<16x1xf32> to vector<16x32xf32>
    %166 = arith.subf %158, %165 : vector<16x32xf32>
    %167 = arith.mulf %164, %166 : vector<16x32xf32>
    %cst_50 = arith.constant dense<0.000000e+00> : vector<16xf32>
    %168 = vector.multi_reduction <add>, %167, %cst_50 [1] : vector<16x32xf32> to vector<16xf32>
    %169 = vector.shape_cast %168 : vector<16xf32> to vector<16x1xf32>
    %cst_51 = arith.constant 3.200000e+01 : f32
    %170 = vector.broadcast %cst_51 : f32 to vector<16x1xf32>
    %171 = arith.divf %169, %170 : vector<16x1xf32>
    %172 = vector.broadcast %162 : vector<16x1xf32> to vector<16x32xf32>
    %173 = arith.subf %158, %172 : vector<16x32xf32>
    %cst_52 = arith.constant 9.99999974E-6 : f32
    %174 = vector.broadcast %cst_52 : f32 to vector<16x1xf32>
    %175 = arith.addf %171, %174 : vector<16x1xf32>
    %176 = math.rsqrt %175 : vector<16x1xf32>
    %177 = vector.broadcast %176 : vector<16x1xf32> to vector<16x32xf32>
    %178 = arith.mulf %173, %177 : vector<16x32xf32>
    %c0_53 = arith.constant 0 : index
    %c0_54 = arith.constant 0 : index
    %c0_55 = arith.constant 0 : index
    %179 = vector.load %arg7[%c0_53, %c0_54, %c0_55] : memref<1x1x32xf32, #tpu.memory_space<vmem>>, vector<1x1x32xf32>
    %180 = vector.shape_cast %179 : vector<1x1x32xf32> to vector<1x32xf32>
    %181 = vector.broadcast %180 : vector<1x32xf32> to vector<16x32xf32>
    %182 = arith.mulf %178, %181 : vector<16x32xf32>
    %c0_56 = arith.constant 0 : index
    %c0_57 = arith.constant 0 : index
    %c0_58 = arith.constant 0 : index
    %183 = vector.load %arg8[%c0_56, %c0_57, %c0_58] : memref<1x1x32xf32, #tpu.memory_space<vmem>>, vector<1x1x32xf32>
    %184 = vector.shape_cast %183 : vector<1x1x32xf32> to vector<1x32xf32>
    %185 = vector.broadcast %184 : vector<1x32xf32> to vector<16x32xf32>
    %186 = arith.addf %182, %185 : vector<16x32xf32>
    %187 = arith.truncf %186 : vector<16x32xf32> to vector<16x32xbf16>
    %c0_59 = arith.constant 0 : index
    %c0_60 = arith.constant 0 : index
    %c0_61 = arith.constant 0 : index
    %188 = vector.load %arg9[%c0_59, %c0_60, %c0_61] : memref<1x32x64xbf16, #tpu.memory_space<vmem>>, vector<1x32x64xbf16>
    %189 = vector.shape_cast %188 : vector<1x32x64xbf16> to vector<32x64xbf16>
    %cst_62 = arith.constant dense<0.000000e+00> : vector<16x64xf32>
    %190 = tpu.matmul %187, %189, %cst_62 {dimension_numbers = #tpu.dot_dimension_numbers<[1], [0], [0], [1], [0, 0, 1, 1], [], []>} : vector<16x32xbf16>, vector<32x64xbf16>, vector<16x64xf32> -> vector<16x64xf32>
    %c0_63 = arith.constant 0 : index
    %c0_64 = arith.constant 0 : index
    %c0_65 = arith.constant 0 : index
    %191 = vector.load %arg10[%c0_63, %c0_64, %c0_65] : memref<1x1x64xf32, #tpu.memory_space<vmem>>, vector<1x1x64xf32>
    %192 = vector.shape_cast %191 : vector<1x1x64xf32> to vector<1x64xf32>
    %193 = vector.broadcast %192 : vector<1x64xf32> to vector<16x64xf32>
    %194 = arith.addf %190, %193 : vector<16x64xf32>
    %cst_66 = arith.constant 0.000000e+00 : f32
    %195 = vector.broadcast %cst_66 : f32 to vector<16x64xf32>
    %196 = arith.maximumf %194, %195 : vector<16x64xf32>
    %197 = arith.truncf %196 : vector<16x64xf32> to vector<16x64xbf16>
    %c0_67 = arith.constant 0 : index
    %c0_68 = arith.constant 0 : index
    %c0_69 = arith.constant 0 : index
    %198 = vector.load %arg11[%c0_67, %c0_68, %c0_69] : memref<1x64x32xbf16, #tpu.memory_space<vmem>>, vector<1x64x32xbf16>
    %199 = vector.shape_cast %198 : vector<1x64x32xbf16> to vector<64x32xbf16>
    %cst_70 = arith.constant dense<0.000000e+00> : vector<16x32xf32>
    %200 = tpu.matmul %197, %199, %cst_70 {dimension_numbers = #tpu.dot_dimension_numbers<[1], [0], [0], [1], [0, 0, 1, 1], [], []>} : vector<16x64xbf16>, vector<64x32xbf16>, vector<16x32xf32> -> vector<16x32xf32>
    %c0_71 = arith.constant 0 : index
    %c0_72 = arith.constant 0 : index
    %c0_73 = arith.constant 0 : index
    %201 = vector.load %arg12[%c0_71, %c0_72, %c0_73] : memref<1x1x32xf32, #tpu.memory_space<vmem>>, vector<1x1x32xf32>
    %202 = vector.shape_cast %201 : vector<1x1x32xf32> to vector<1x32xf32>
    %203 = vector.broadcast %202 : vector<1x32xf32> to vector<16x32xf32>
    %204 = arith.addf %200, %203 : vector<16x32xf32>
    %205 = arith.addf %186, %204 : vector<16x32xf32>
    %cst_74 = arith.constant dense<0.000000e+00> : vector<16xf32>
    %206 = vector.multi_reduction <add>, %205, %cst_74 [1] : vector<16x32xf32> to vector<16xf32>
    %207 = vector.shape_cast %206 : vector<16xf32> to vector<16x1xf32>
    %cst_75 = arith.constant 3.200000e+01 : f32
    %208 = vector.broadcast %cst_75 : f32 to vector<16x1xf32>
    %209 = arith.divf %207, %208 : vector<16x1xf32>
    %210 = vector.broadcast %209 : vector<16x1xf32> to vector<16x32xf32>
    %211 = arith.subf %205, %210 : vector<16x32xf32>
    %212 = vector.broadcast %209 : vector<16x1xf32> to vector<16x32xf32>
    %213 = arith.subf %205, %212 : vector<16x32xf32>
    %214 = arith.mulf %211, %213 : vector<16x32xf32>
    %cst_76 = arith.constant dense<0.000000e+00> : vector<16xf32>
    %215 = vector.multi_reduction <add>, %214, %cst_76 [1] : vector<16x32xf32> to vector<16xf32>
    %216 = vector.shape_cast %215 : vector<16xf32> to vector<16x1xf32>
    %cst_77 = arith.constant 3.200000e+01 : f32
    %217 = vector.broadcast %cst_77 : f32 to vector<16x1xf32>
    %218 = arith.divf %216, %217 : vector<16x1xf32>
    %219 = vector.broadcast %209 : vector<16x1xf32> to vector<16x32xf32>
    %220 = arith.subf %205, %219 : vector<16x32xf32>
    %cst_78 = arith.constant 9.99999974E-6 : f32
    %221 = vector.broadcast %cst_78 : f32 to vector<16x1xf32>
    %222 = arith.addf %218, %221 : vector<16x1xf32>
    %223 = math.rsqrt %222 : vector<16x1xf32>
    %224 = vector.broadcast %223 : vector<16x1xf32> to vector<16x32xf32>
    %225 = arith.mulf %220, %224 : vector<16x32xf32>
    %c0_79 = arith.constant 0 : index
    %c0_80 = arith.constant 0 : index
    %c0_81 = arith.constant 0 : index
    %226 = vector.load %arg13[%c0_79, %c0_80, %c0_81] : memref<1x1x32xf32, #tpu.memory_space<vmem>>, vector<1x1x32xf32>
    %227 = vector.shape_cast %226 : vector<1x1x32xf32> to vector<1x32xf32>
    %228 = vector.broadcast %227 : vector<1x32xf32> to vector<16x32xf32>
    %229 = arith.mulf %225, %228 : vector<16x32xf32>
    %c0_82 = arith.constant 0 : index
    %c0_83 = arith.constant 0 : index
    %c0_84 = arith.constant 0 : index
    %230 = vector.load %arg14[%c0_82, %c0_83, %c0_84] : memref<1x1x32xf32, #tpu.memory_space<vmem>>, vector<1x1x32xf32>
    %231 = vector.shape_cast %230 : vector<1x1x32xf32> to vector<1x32xf32>
    %232 = vector.broadcast %231 : vector<1x32xf32> to vector<16x32xf32>
    %233 = arith.addf %229, %232 : vector<16x32xf32>
    %234 = vector.shape_cast %233 : vector<16x32xf32> to vector<2x8x32xf32>
    %c0_85 = arith.constant 0 : index
    %c0_86 = arith.constant 0 : index
    %c0_87 = arith.constant 0 : index
    %235 = vector.load %arg16[%c0_85, %c0_86, %c0_87] : memref<2x8x32xf32, #tpu.memory_space<vmem>>, vector<2x8x32xf32>
    tpu.vector_store %arg16[%c0_85, %c0_86, %c0_87], %234 {strides = array<i32>} : memref<2x8x32xf32, #tpu.memory_space<vmem>>, vector<2x8x32xf32>,
    %c1_i32 = arith.constant 1 : i32
    %236 = arith.cmpi eq, %arg1, %c1_i32 : i32
    %237 = arith.extui %236 : i1 to i32
    %c0_i32_88 = arith.constant 0 : i32
    %238 = arith.cmpi ne, %237, %c0_i32_88 : i32
    scf.if %238 {
      %cst_89 = arith.constant dense<0.000000e+00> : vector<2x32xf32>
      %239 = vector.multi_reduction <add>, %234, %cst_89 [1] : vector<2x8x32xf32> to vector<2x32xf32>
      %240 = vector.shape_cast %239 : vector<2x32xf32> to vector<2x1x32xf32>
      %cst_90 = arith.constant 8.000000e+00 : f32
      %241 = vector.broadcast %cst_90 : f32 to vector<2x1x32xf32>
      %242 = arith.divf %240, %241 : vector<2x1x32xf32>
      %c0_91 = arith.constant 0 : index
      %c0_92 = arith.constant 0 : index
      %c0_93 = arith.constant 0 : index
      %243 = vector.load %arg15[%c0_91, %c0_92, %c0_93] : memref<2x1x32xf32, #tpu.memory_space<vmem>>, vector<2x1x32xf32>
      tpu.vector_store %arg15[%c0_91, %c0_92, %c0_93], %242 {strides = array<i32>} : memref<2x1x32xf32, #tpu.memory_space<vmem>>, vector<2x1x32xf32>,
    } else {
    }
    return
  }
  func.func @transform_0(%arg0: i32, %arg1: i32) -> (i32, i32, i32) {
    %c0_i32 = arith.constant 0 : i32
    %c0_i32_0 = arith.constant 0 : i32
    %c0_i32_1 = arith.constant 0 : i32
    return %arg0, %c0_i32, %c0_i32_0 : i32, i32, i32
  }
  func.func @transform_1(%arg0: i32, %arg1: i32) -> (i32, i32, i32) {
    %c0_i32 = arith.constant 0 : i32
    %c0_i32_0 = arith.constant 0 : i32
    %c0_i32_1 = arith.constant 0 : i32
    return %arg1, %c0_i32, %c0_i32_0 : i32, i32, i32
  }
  func.func @transform_2(%arg0: i32, %arg1: i32) -> (i32, i32, i32) {
    %c0_i32 = arith.constant 0 : i32
    %c0_i32_0 = arith.constant 0 : i32
    %c0_i32_1 = arith.constant 0 : i32
    return %arg1, %c0_i32, %c0_i32_0 : i32, i32, i32
  }
  func.func @transform_3(%arg0: i32, %arg1: i32) -> (i32, i32, i32) {
    %c0_i32 = arith.constant 0 : i32
    %c0_i32_0 = arith.constant 0 : i32
    %c0_i32_1 = arith.constant 0 : i32
    return %arg1, %c0_i32, %c0_i32_0 : i32, i32, i32
  }
  func.func @transform_4(%arg0: i32, %arg1: i32) -> (i32, i32, i32) {
    %c0_i32 = arith.constant 0 : i32
    %c0_i32_0 = arith.constant 0 : i32
    %c0_i32_1 = arith.constant 0 : i32
    return %arg1, %c0_i32, %c0_i32_0 : i32, i32, i32
  }
  func.func @transform_5(%arg0: i32, %arg1: i32) -> (i32, i32, i32) {
    %c0_i32 = arith.constant 0 : i32
    %c0_i32_0 = arith.constant 0 : i32
    %c0_i32_1 = arith.constant 0 : i32
    return %arg1, %c0_i32, %c0_i32_0 : i32, i32, i32
  }
  func.func @transform_6(%arg0: i32, %arg1: i32) -> (i32, i32, i32) {
    %c0_i32 = arith.constant 0 : i32
    %c0_i32_0 = arith.constant 0 : i32
    %c0_i32_1 = arith.constant 0 : i32
    return %arg1, %c0_i32, %c0_i32_0 : i32, i32, i32
  }
  func.func @transform_7(%arg0: i32, %arg1: i32) -> (i32, i32, i32) {
    %c0_i32 = arith.constant 0 : i32
    %c0_i32_0 = arith.constant 0 : i32
    %c0_i32_1 = arith.constant 0 : i32
    return %arg1, %c0_i32, %c0_i32_0 : i32, i32, i32
  }
  func.func @transform_8(%arg0: i32, %arg1: i32) -> (i32, i32, i32) {
    %c0_i32 = arith.constant 0 : i32
    %c0_i32_0 = arith.constant 0 : i32
    %c0_i32_1 = arith.constant 0 : i32
    return %arg1, %c0_i32, %c0_i32_0 : i32, i32, i32
  }
  func.func @transform_9(%arg0: i32, %arg1: i32) -> (i32, i32, i32) {
    %c0_i32 = arith.constant 0 : i32
    %c0_i32_0 = arith.constant 0 : i32
    %c0_i32_1 = arith.constant 0 : i32
    return %arg1, %c0_i32, %c0_i32_0 : i32, i32, i32
  }
  func.func @transform_10(%arg0: i32, %arg1: i32) -> (i32, i32, i32) {
    %c0_i32 = arith.constant 0 : i32
    %c0_i32_0 = arith.constant 0 : i32
    %c0_i32_1 = arith.constant 0 : i32
    return %arg1, %c0_i32, %c0_i32_0 : i32, i32, i32
  }
  func.func @transform_11(%arg0: i32, %arg1: i32) -> (i32, i32, i32) {
    %c0_i32 = arith.constant 0 : i32
    %c0_i32_0 = arith.constant 0 : i32
    %c0_i32_1 = arith.constant 0 : i32
    return %arg1, %c0_i32, %c0_i32_0 : i32, i32, i32
  }
  func.func @transform_12(%arg0: i32, %arg1: i32) -> (i32, i32, i32) {
    %c0_i32 = arith.constant 0 : i32
    %c0_i32_0 = arith.constant 0 : i32
    %c0_i32_1 = arith.constant 0 : i32
    return %arg1, %c0_i32, %c0_i32_0 : i32, i32, i32
  }
  func.func @transform_13(%arg0: i32, %arg1: i32) -> (i32, i32, i32) {
    %c0_i32 = arith.constant 0 : i32
    %c0_i32_0 = arith.constant 0 : i32
    %c0_i32_1 = arith.constant 0 : i32
    return %arg0, %c0_i32, %c0_i32_0 : i32, i32, i32
  }
}

</mosaic_0001>

<bundles_post_ra>
// kernel: tpu_custom_call.1
= control target key start
LH: loop header
LB: loop body
LE: loop exit
PB: predicated region body
PF: predicated region fallthrough
CT: control target
= control target key end

     0   :  { %s2690_s0 = inlined_call_operand.hbm [shape: f32[2,8,32], index: 0, kind: input, shape index: {}]   ;;  %s2691_s1 = inlined_call_operand.vmem [shape: bf16[2,32,96], index: 1, kind: input, shape index: {}]   ;;  %s2692_s2 = inlined_call_operand.hbm [shape: f32[2,1,96], index: 2, kind: input, shape index: {}]   ;;  %s2693_s3 = inlined_call_operand.vmem [shape: bf16[2,32,32], index: 3, kind: input, shape index: {}]   ;;  %s2694_s4 = inlined_call_operand.vmem [shape: f32[2,1,32], index: 4, kind: input, shape index: {}]   ;;  %s2695_s5 = inlined_call_operand.hbm [shape: f32[2,1,32], index: 5, kind: input, shape index: {}]   ;;  %s2696_s6 = inlined_call_operand.vmem [shape: f32[2,1,32], index: 6, kind: input, shape index: {}]   ;;  %s2697_s7 = inlined_call_operand.vmem [shape: bf16[2,32,64], index: 7, kind: input, shape index: {}]   ;;  %s2698_s8 = inlined_call_operand.vmem [shape: f32[2,1,64], index: 8, kind: input, shape index: {}]   ;;  %s2699_s9 = inlined_call_operand.vmem [shape: bf16[2,64,32], index: 9, kind: input, shape index: {}]   ;;  %s2700_s10 = inlined_call_operand.vmem [shape: f32[2,1,32], index: 10, kind: input, shape index: {}]   ;;  %s2701_s11 = inlined_call_operand.hbm [shape: f32[2,1,32], index: 11, kind: input, shape index: {}]   ;;  %s2702_s12 = inlined_call_operand.vmem [shape: f32[2,1,32], index: 12, kind: input, shape index: {}]   ;;  %s2703_s13 = inlined_call_operand.hbm [shape: f32[2,1,32], index: 13, kind: output, shape index: {}]  }
   0x1   :  { %2707 = sst [smem:[#allocation20_spill]] %s2690_s0 }
   0x2   :  { %2708 = sst [smem:[#allocation21_spill]] %s2691_s1 }
   0x3   :  { %2709 = sst [smem:[#allocation22_spill]] %s2692_s2 }
   0x4   :  { %2710 = sst [smem:[#allocation23_spill]] %s2693_s3 }
   0x5   :  { %2711 = sst [smem:[#allocation24_spill]] %s2695_s5 }
   0x6   :  { %2712 = sst [smem:[#allocation25_spill]] %s2698_s8 }
   0x7   :  { %2713 = sst [smem:[#allocation26_spill]] %s2699_s9 }
   0x8   :  { %2714 = sst [smem:[#allocation27_spill]] %s2700_s10 }
   0x9   :  { %2715 = sst [smem:[#allocation28_spill]] %s2701_s11 }
   0xa   :  { %2716 = sst [smem:[#allocation29_spill]] %s2702_s12 }
   0xb   :  { %2717 = sst [smem:[#allocation30_spill]] %s2703_s13 }
   0xc   :  { %18 = vsyncpa [#allocation4], 0 }
   0xd   :  { %19 = vsyncpa [#allocation7], 0 }
   0xe   :  { %21 = vsyncpa [#allocation7 + $0x1], 0 }
   0xf   :  { %22 = vsyncpa [#allocation10], 0 }
  0x10   :  { %24 = vsyncpa [#allocation10 + $0x1], 0 }
  0x11   :  { %25 = vsyncpa [#allocation5], 0  ;;  %s2306_s25 = smov 0   ;;  %s2308_s26 = smov 0  }
  0x12   :  { %s2310_s27 = smov 0   ;;  %s2312_s28 = smov 0  }
  0x13   :  { %s2314_s29 = smov 0   ;;  %s2316_s30 = smov 0  }
  0x14 LB: > { %2718 = sst [smem:[#allocation16_spill]] %s2201_s27  ;;  %s40_s14 = sadd.s32 1, %s2209_s29  ;;  %s2213_s30 = sphi %s2316_s30, %s31_s30   ;;  %s2209_s29 = sphi %s2314_s29, %s2752_s29   ;;  %s2205_s28 = sphi %s2312_s28, %s2751_s28   ;;  %s2201_s27 = sphi %s2310_s27, %s2747_s27   ;;  %s2197_s26 = sphi %s2308_s26, %s2750_s26   ;;  %s2193_s25 = sphi %s2306_s25, %s2749_s25  }
  0x15   : > { %2719 = sst [smem:[#allocation17_spill]] %s2213_s30  ;;  %s102_s15 = sadd.s32 1, %s2201_s27 }
  0x16   : > { %p41_p0 = scmp.ge.s32.totalorder %s40_s14, 2  ;;  %p109_p1 = scmp.ne.s32.totalorder %s2201_s27, %s2197_s26 }
  0x17   : > { %p110_p2 = scmp.eq.s32.totalorder %s2213_s30, 0  ;;  %p115_p3 = scmp.ne.s32.totalorder %s2197_s26, %s2193_s25 }
  0x18   : > { %s2754_s14 = smov (%p41_p0, %s40_s14), 0  ;;  %p1863_p5 = scmp.lt.s32.totalorder %s2213_s30, 2 }
  0x19   : > { %2720 = sst [smem:[#allocation18_spill]] %s2754_s14  ;;  %p2345_p4 = por %p110_p2, %p109_p1 }
  0x1a   : > { %s99_s17 = ssub.s32 %s2209_s29, %s2754_s14  ;;  %s450_s18 = sand.u32 1, %s2213_s30  }
  0x1b   : > { %p100_p6 = scmp.eq.s32.totalorder %s99_s17, 0  ;;  %s2354_s19 = sand.u32 1, %s2201_s27  }
  0x1c   : > { %s2723_s2 = sld [smem:[#allocation22_spill]]  ;;  %s453_s13 = scalar_lea.vmem [#allocation6], %s2354_s19 }
  0x1d   : > { %s2357_s20 = scalar_select %p100_p6, %s2201_s27, %s102_s15  }
  0x1e   : > { %s460_s12 = sshll.u32 %s453_s13, 4  ;;  %p2366_p7 = pnand %p1863_p5, %p2345_p4  ;;  %s461_s12 = int_to_ptr.vmem [resolvable:$true] %s460_s12 }
  0x1f   : > { %2722 = sst [smem:[#allocation19_spill]] %s2357_s20  ;;  %s2371_s14 = sadd.s32 4294967295, %s2213_s30  }
  0x20   : > { %p116_p8 = scmp.eq.s32.totalorder %s2371_s14, 0  ;;  %s451_s15 = scalar_lea.sflag [#allocation7], %s450_s18 }
  0x21   : > { %p1741_p10 = scmp.ge.s32.totalorder %s2213_s30, 1  ;;  %p412_p11 = scmp.lt.s32.totalorder %s2213_s30, 3 }
  0x22   : > { %s456_s23 = scalar_lea.hbm %s2723_s2, %s2209_s29  ;;  %p2381_p9 = por %p116_p8, %p115_p3 }
  0x23   : > { %s458_s24 = sshll.u32 %s456_s23, 4  ;;  %s2726_s0 = sld [smem:[#allocation20_spill]]  ;;  %s459_s24 = int_to_ptr.hbm [resolvable:$true] %s458_s24 }
  0x24   : > { %1855 = dma.hbm_to_vmem [thread:$0]  (!%p2366_p7), %s459_s24, 16, %s461_s12, %s451_s15  }
  0x25   : > { %p2390_p12 = pnand %p1741_p10, %p412_p11  ;;  %s2215_s12 = smov [#allocation3]  }
  0x26   : > { %s428_s25 = sshll.u32 %s2215_s12, 4  ;;  %s2728_s5 = sld [smem:[#allocation24_spill]]  ;;  %s429_s25 = int_to_ptr.vmem [resolvable:$true] %s428_s25 }
  0x27   : > { %p1848_p13 = pneg %p2390_p12  ;;  %s2216_s20 = smov 128  }
  0x28   : > { %s2217_s27 = smov 8   ;;  %s2729_s11 = sld [smem:[#allocation28_spill]] }
  0x29   : > { %s426_s22 = sshll.u32 %s2726_s0, 4  ;;  %p1849_p0 = pnand %p1848_p13, %p116_p8  ;;  %s427_s22 = int_to_ptr.hbm [resolvable:$true] %s426_s22 }
  0x2a   : > { %s484_s0 = scalar_lea.vmem [#allocation8], %s2354_s19  ;;  %s535_s8 = scalar_lea.vmem [#allocation9], %s2354_s19 }
  0x2b   : > { %s491_s2 = sshll.u32 %s484_s0, 4  ;;  %s542_s18 = sshll.u32 %s535_s8, 4  ;;  %s492_s2 = int_to_ptr.vmem [resolvable:$true] %s491_s2  ;;  %s543_s18 = int_to_ptr.vmem [resolvable:$true] %s542_s18 }
  0x2c   : > { %s487_s16 = scalar_lea.hbm %s2728_s5, %s2209_s29  ;;  %s533_s24 = scalar_lea.sflag [#allocation10], %s2354_s19 }
  0x2d   : > { %s489_s21 = sshll.u32 %s487_s16, 4  ;;  %s490_s21 = int_to_ptr.hbm [resolvable:$true] %s489_s21 }
  0x2e   : > { %1851 = dma.hbm_to_vmem [thread:$0]  (!%p1849_p0), %s427_s22, 256, %s429_s25, [#allocation4], %s2216_s20, %s2216_s20, %s2217_s27  }
  0x2f   : > { %1858 = dma.hbm_to_vmem [thread:$0]  (!%p2366_p7), %s490_s21, 16, %s492_s2, %s451_s15  }
  0x30   : > { %s538_s10 = scalar_lea.hbm %s2729_s11, %s2209_s29  ;;  %557 = sbr.rel (%p2390_p12) target bundleno = 2073 (0x819), region = 72 }
  0x31   : > { %s540_s9 = sshll.u32 %s538_s10, 4  ;;  %s541_s9 = int_to_ptr.hbm [resolvable:$true] %s540_s9 }
  0x32   : > { %1861 = dma.hbm_to_vmem [thread:$0]  (!%p2366_p7), %s541_s9, 16, %s543_s18, %s533_s24  }
  0x35   : > { %2176 = dma.done.wait (%p116_p8), [#allocation4], 256  }
  0x36   : > { %2178 = vsyncadd (%p116_p8), [#allocation4], 4294967040  ;;  %s564_s0 = sand.u32 1, %s2371_s14   ;;  %s2421_s2 = sand.u32 1, %s2197_s26  }
  0x37   : > { %s565_s8 = scalar_lea.sflag [#allocation7], %s564_s0 }
  0x38   : > { %2180 = dma.done.wait (%p2381_p9), %s565_s8, 32  }
  0x39   : > { %2182 = vsyncadd (%p2381_p9), %s565_s8, 4294967264  ;;  %s583_s27 = scalar_lea.sflag [#allocation10], %s2421_s2 }
  0x3a   : > { %2184 = dma.done.wait (%p2381_p9), %s583_s27, 16  }
  0x3b   : > { %2186 = vsyncadd (%p2381_p9), %s583_s27, 4294967280  ;;  %p667_p1 = scmp.lt.s32.totalorder %s2205_s28, 1  ;;  %s2730_s1 = sld [smem:[#allocation21_spill]] }
  0x3c   : > { %s2731_s3 = sld [smem:[#allocation23_spill]]  ;;  %p1754_p2 = scmp.ne.s32.totalorder %s2205_s28, 0 }
  0x3d   : > { %s2437_s19 = scalar_select %p667_p1, %s2205_s28, 1 }
  0x3e   : > { %s2732_s9 = sld [smem:[#allocation25_spill]] }
  0x3f   : > { %s1820_s20 = sshll.u32 %s2437_s19, 4  ;;  %s1823_s23 = sshll.u32 %s2437_s19, 5 }
  0x40   : > { %s2459_s30 = scalar_lea.vmem %s2697_s7, %s1820_s20  ;;  %s2734_s5 = sld [smem:[#allocation27_spill]] }
  0x41   : > { %s671_s25 = scalar_lea.vmem %s2730_s1, %s1820_s20  ;;  %s2733_s1 = sld [smem:[#allocation26_spill]] }
  0x42   : > { %s2450_s12 = scalar_lea.vmem %s2731_s3, %s1820_s20  ;;  %s2735_s11 = sld [smem:[#allocation29_spill]] }
  0x44   : > { %s690_s22 = scalar_lea.vmem %s2732_s9, %s2437_s19  ;;  %707 = sbr.rel (%p1754_p2) target bundleno = 76 (0x4c), region = 92 }
  0x46   : > { %s698_s18 = scalar_lea.vmem %s2734_s5, %s2437_s19 }
  0x47   : > { %s2469_s16 = scalar_lea.vmem %s2733_s1, %s1823_s23 }
  0x48   : > { %s701_s8 = scalar_lea.vmem %s2735_s11, %s2437_s19 }
  0x49   : > { %v708_v0 = vld [vmem:[#allocation3] sm:$0xff]  ;;  %vm710_vm0 = vcmask 261120   ;;  %v709_v1 = vld [vmem:[#allocation3 + $0x8] sm:$0xff] }
  0x4a   : > { %711 = vst.msk [vmem:[#allocation2] sm:$0xff] %vm710_vm0, %v708_v0 }
  0x4b   : > { %712 = vst.msk [vmem:[#allocation2 + $0x8] sm:$0xff] %vm710_vm0, %v709_v1 }
  0x4c PF: > { %v1825_v2 = vld [vmem:[%s671_s25 + $0x8] sm:$0xff]  ;;  %v1824_v3 = vld [vmem:[%s671_s25] sm:$0xff]  ;;  %vm736_vm1 = vcmask 261120   ;;  %s2736_s1 = scalar_lea.vmem [#allocation6], %s2421_s2  ;;  %s2218_s3 = smov 104   ;;  %vm761_vm2 = vcmask 64512  }
  0x4d   : > { %746 = vmatpush.bf16.msra.mxu0 %v1825_v2  ;;  %v1951_v7 = vld [vmem:[%s2736_s1] ss:$0 sm:$0xff]  ;;  %s2219_s5 = smov 120   ;;  %s2220_s11 = smov 96   ;;  %vm798_vm3 = vcmask 1043456   ;;  %vm996_vm4 = vcmask 130048  }
  0x4e   : > { %s2221_s10 = smov 80   ;;  %s2222_s9 = smov 72   ;;  %vm998_vm5 = vcmask 195584   ;;  %vm1420_vm13 = vcmask 523264  }
  0x4f   : > { %s2223_s20 = smov 88   ;;  %s2224_s25 = smov 112  }
  0x50   : > { %s2225_s0 = smov 56   ;;  %s2226_s27 = smov 64  }
  0x51   : > { %v2480_v4 = vld [vmem:[#allocation2] sm:$0xff]  ;;  %747 = vmatpush.bf16.msra.mxu0 %v1824_v3  ;;  %s2227_s17 = smov 48   ;;  %s2228_s15 = smov 40  }
  0x52   : > { %v2482_v5 = vld [vmem:[#allocation2 + $0x8] sm:$0xff]  ;;  %s2229_s23 = smov 8   ;;  %s2230_s13 = smov 16  }
  0x53   : > { %v715_v6 = vpack.c.bf16 %v2482_v5, %v2480_v4  ;;  %s2231_s21 = smov 24   ;;  %s2737_s1 = scalar_lea.vmem %s2694_s4, %s2437_s19 }
  0x54   : > { %p1815_p3 = scmp.ne.s32.totalorder %s2205_s28, 1 }
  0x55   : > { %1763 = vmatmul.msk.bf16.vlgmr.msra.gmra.mxu0 %vm736_vm1, %v715_v6 }
  0xd2   : > { %v749_v8 = vpop.f32.mrf.mxu0 }
  0xd3   : > { %v750_v9 = vadd.f32 %v1951_v7, %v749_v8 }
  0xd5   : > { %v754_v10 = vpack.c.bf16 %v750_v9, %v750_v9 }
  0xd7   : > { %v757_v11 = vunpack.c.l.b16 %v754_v10 }
  0xd9   : > { %v2489_v12 = vpack.c.b16 %v757_v11, %v757_v11 }
  0xda   : > { %v751_v13 = vpop.f32.mrf.mxu0 }
  0xdb   : > { %927 = vrot.lane.b32.xlu2 %v2489_v12, %s2218_s3  ;;  %815 = vrot.lane.b32.xlu1 %v2489_v12, %s2219_s5  ;;  %v752_v14 = vadd.f32 %v1951_v7, %v751_v13 }
  0xdc   : > { %759 = vrot.lane.b32.xlu0 %v2489_v12, %s2220_s11 }
  0xdd   : > { %v755_v15 = vpack.c.bf16 %v752_v14, %v752_v14 }
  0xdf   : > { %v1001_v16 = vunpack.c.l.b16 %v755_v15 }
  0xe1   : > { %v2497_v17 = vpack.c.b16 %v1001_v16, %v1001_v16 }
  0xe3   : > { %873 = vrot.lane.b32.xlu2 %v2489_v12, %s2221_s10  ;;  %929 = vrot.lane.b32.xlu1 %v2489_v12, %s2222_s9 }
  0xe4   : > { %817 = vrot.lane.b32.xlu0 %v2489_v12, %s2223_s20 }
  0xeb   : > { %1057 = vrot.lane.b32.xlu2 %v2497_v17, %s2219_s5  ;;  %871 = vrot.lane.b32.xlu1 %v2489_v12, %s2224_s25 }
  0xec   : > { %1059 = vrot.lane.b32.xlu0 %v2497_v17, %s2223_s20 }
  0xf3   : > { %1169 = vrot.lane.b32.xlu2 %v2497_v17, %s2218_s3  ;;  %1171 = vrot.lane.b32.xlu1 %v2497_v17, %s2222_s9 }
  0xf4   : > { %1003 = vrot.lane.b32.xlu0 %v2497_v17, %s2220_s11  ;;  %s2739_s11 = scalar_lea.vmem %s2696_s6, %s2437_s19 }
  0xfb   : > { %1113 = vrot.lane.b32.xlu1 %v2497_v17, %s2224_s25 }
  0xfc   : > { %1115 = vrot.lane.b32.xlu0 %v2497_v17, %s2221_s10 }
 0x103   : > { %850 = vrot.lane.b32.xlu1 %v2489_v12, %s2225_s0 }
 0x135   : > { %v928_v18 = vpop.permute.xlu2 %927 }
 0x13d   : > { %v874_v19 = vpop.permute.xlu2 %873 }
 0x13e   : > { %v879_v20 = vsel %vm761_vm2, %v874_v19, 0 }
 0x13f   : > { %888 = vmatpush.bf16.xpose.msrb.mxu0 %v879_v20 }
 0x145   : > { %v1058_v37 = vpop.permute.xlu2 %1057 }
 0x14d   : > { %v816_v21 = vpop.permute.xlu1 %815  ;;  %v1170_v39 = vpop.permute.xlu2 %1169 }
 0x14e   : > { %v760_v22 = vpop.permute.xlu0 %759 }
 0x14f   : > { %v766_v23 = vsel %vm761_vm2, %v760_v22, 0 }
 0x150   : > { %775 = vmatpush.bf16.xpose.msra.mxu1 %v766_v23 }
 0x155   : > { %v930_v24 = vpop.permute.xlu1 %929 }
 0x156   : > { %v818_v25 = vpop.permute.xlu0 %817  ;;  %v935_v26 = vsel %vm761_vm2, %v930_v24, 0 }
 0x157   : > { %1764 = vmatmul.msk.bf16.vlgmr.msra.gmra.mxu1 %vm761_vm2, %v754_v10  ;;  %v823_v27 = vsel %vm761_vm2, %v818_v25, 0 }
 0x158   : > { %832 = vmatpush.bf16.xpose.msra.mxu3 %v823_v27 }
 0x15d   : > { %v872_v28 = vpop.permute.xlu1 %871 }
 0x15e   : > { %v1060_v29 = vpop.permute.xlu0 %1059  ;;  %1768 = vmatmul.msk.bf16.vlgmr.msrb.gmra.mxu0 %vm761_vm2, %v872_v28 }
 0x15f   : > { %v1065_v30 = vsel %vm761_vm2, %v1060_v29, 0  ;;  %1766 = vmatmul.msk.bf16.vlgmr.msra.gmra.mxu3 %vm761_vm2, %v816_v21 }
 0x160   : > { %944 = vmatpush.bf16.xpose.msrb.mxu3 %v935_v26 }
 0x165   : > { %v1172_v33 = vpop.permute.xlu1 %1171 }
 0x166   : > { %v1004_v31 = vpop.permute.xlu0 %1003  ;;  %v1177_v35 = vsel %vm761_vm2, %v1172_v33, 0 }
 0x167   : > { %v1009_v32 = vsel %vm761_vm2, %v1004_v31, 0 }
 0x168   : > { %1074 = vmatpush.bf16.xpose.msra.mxu3 %v1065_v30  ;;  %1018 = vmatpush.bf16.xpose.msra.mxu0 %v1009_v32 }
 0x16d   : > { %v1114_v38 = vpop.permute.xlu1 %1113 }
 0x16e   : > { %v1116_v34 = vpop.permute.xlu0 %1115 }
 0x16f   : > { %v1121_v36 = vsel %vm761_vm2, %v1116_v34, 0  ;;  %1770 = vmatmul.msk.bf16.vlgmr.msrb.gmra.mxu3 %vm761_vm2, %v928_v18  ;;  %1772 = vmatmul.msk.bf16.vlgmr.msra.gmra.mxu0 %vm761_vm2, %v755_v15 }
 0x170   : > { %1186 = vmatpush.bf16.xpose.msrb.mxu3 %v1177_v35  ;;  %1130 = vmatpush.bf16.xpose.msrb.mxu0 %v1121_v36 }
 0x175   : > { %v851_v11 = vpop.permute.xlu1 %850 }
 0x176   : > { %v856_v18 = vsel %vm798_vm3, %v851_v11, 0 }
 0x17f   : > { %1774 = vmatmul.msk.bf16.vlgmr.msra.gmra.mxu3 %vm761_vm2, %v1058_v37  ;;  %1776 = vmatmul.msk.bf16.vlgmr.msrb.gmra.mxu0 %vm761_vm2, %v1114_v38 }
 0x18f   : > { %1778 = vmatmul.msk.bf16.vlgmr.msrb.gmra.mxu3 %vm761_vm2, %v1170_v39 }
 0x1d4   : > { %v777_v40 = vpop.f32.mrf.mxu1 }
 0x1d5   : > { %v781_v41 = vsel %vm761_vm2, %v777_v40, -inf }
 0x1d6   : > { %782 = vmax.xlane.f32.xlu2 %v781_v41 }
 0x1db   : > { %v890_v42 = vpop.f32.mrf.mxu0 }
 0x1dc   : > { %v779_v43 = vpop.f32.mrf.mxu1  ;;  %v894_v44 = vsel %vm761_vm2, %v890_v42, -inf }
 0x1de   : > { %895 = vmax.xlane.f32.xlu2 %v894_v44 }
 0x1e2   : > { %v834_v45 = vpop.f32.mrf.mxu3 }
 0x1e3   : > { %v892_v46 = vpop.f32.mrf.mxu0  ;;  %v838_v47 = vsel %vm761_vm2, %v834_v45, -inf }
 0x1e4   : > { %839 = vmax.xlane.f32.xlu0 %v838_v47 }
 0x1ea   : > { %v836_v48 = vpop.f32.mrf.mxu3 }
 0x1ec   : > { %v1020_v49 = vpop.f32.mrf.mxu0 }
 0x1ed   : > { %v1024_v50 = vsel %vm761_vm2, %v1020_v49, -inf }
 0x1ee   : > { %1025 = vmax.xlane.f32.xlu1 %v1024_v50 }
 0x1f2   : > { %v2529_v51 = vpop.f32.mrf.mxu3 }
 0x1f3   : > { %v950_v53 = vsel %vm761_vm2, %v2529_v51, -inf }
 0x1f4   : > { %v1022_v52 = vpop.f32.mrf.mxu0 }
 0x1f6   : > { %793 = vrot.lane.b32.xlu2 %v2489_v12, %s2226_s27  ;;  %951 = vmax.xlane.f32.xlu1 %v950_v53 }
 0x1fa   : > { %v948_v54 = vpop.f32.mrf.mxu3 }
 0x1fc   : > { %v1132_v55 = vpop.f32.mrf.mxu0 }
 0x1fd   : > { %v1136_v56 = vsel %vm761_vm2, %v1132_v55, -inf }
 0x1fe   : > { %1137 = vmax.xlane.f32.xlu0 %v1136_v56 }
 0x202   : > { %v2536_v57 = vpop.f32.mrf.mxu3 }
 0x203   : > { %v1080_v63 = vsel %vm761_vm2, %v2536_v57, -inf }
 0x204   : > { %v1134_v58 = vpop.f32.mrf.mxu0 }
 0x20a   : > { %v1078_v59 = vpop.f32.mrf.mxu3 }
 0x20f   : > { %906 = vrot.lane.b32.xlu1 %v2489_v12, %s2227_s17 }
 0x212   : > { %v1188_v60 = vpop.f32.mrf.mxu3 }
 0x213   : > { %v1192_v61 = vsel %vm761_vm2, %v1188_v60, -inf }
 0x214   : > { %1193 = vmax.xlane.f32.xlu0 %v1192_v61 }
 0x21a   : > { %v1190_v62 = vpop.f32.mrf.mxu3 }
 0x21f   : > { %1081 = vmax.xlane.f32.xlu2 %v1080_v63 }
 0x249   : > { %v783_v0 = vpop.xlane.xlu2 %782 }
 0x24a   : > { %v784_v1 = vsub.f32 %v777_v40, %v783_v0 }
 0x24c   : > { %v785_v2 = vmul.f32 1.442695, %v784_v1 }
 0x24e   : > { %1959 = vpow2.f32 %v785_v2 }
 0x251   : > { %v896_v3 = vpop.xlane.xlu2 %895 }
 0x252   : > { %v897_v6 = vsub.f32 %v890_v42, %v896_v3 }
 0x254   : > { %v2543_v7 = vpop.eup %1959  ;;  %v898_v8 = vmul.f32 1.442695, %v897_v6 }
 0x255   : > { %v787_v9 = vsel %vm761_vm2, %v2543_v7, 0.0 }
 0x256   : > { %1961 = vpow2.f32 %v898_v8  ;;  %788 = vadd.xlane.f32.xlu0 %v787_v9 }
 0x257   : > { %v840_v10 = vpop.xlane.xlu0 %839 }
 0x258   : > { %v841_v13 = vsub.f32 %v834_v45, %v840_v10 }
 0x259   : > { %v794_v14 = vpop.permute.xlu2 %793 }
 0x25a   : > { %v842_v15 = vmul.f32 1.442695, %v841_v13  ;;  %v800_v16 = vsel %vm798_vm3, %v794_v14, 0 }
 0x25b   : > { %809 = vmatpush.bf16.msra.mxu2 %v800_v16 }
 0x25c   : > { %v2549_v19 = vpop.eup %1961  ;;  %1963 = vpow2.f32 %v842_v15 }
 0x25d   : > { %v900_v20 = vsel %vm761_vm2, %v2549_v19, 0.0 }
 0x25e   : > { %901 = vadd.xlane.f32.xlu2 %v900_v20 }
 0x25f   : > { %865 = vmatpush.bf16.msrb.mxu2 %v856_v18 }
 0x261   : > { %v1026_v23 = vpop.xlane.xlu1 %1025 }
 0x262   : > { %v2553_v21 = vpop.eup %1963  ;;  %v1027_v26 = vsub.f32 %v1020_v49, %v1026_v23 }
 0x263   : > { %v844_v22 = vsel %vm761_vm2, %v2553_v21, 0.0 }
 0x264   : > { %845 = vadd.xlane.f32.xlu1 %v844_v22  ;;  %v1028_v28 = vmul.f32 1.442695, %v1027_v26 }
 0x266   : > { %1965 = vpow2.f32 %v1028_v28 }
 0x269   : > { %v952_v24 = vpop.xlane.xlu1 %951 }
 0x26a   : > { %962 = vrot.lane.b32.xlu0 %v2489_v12, %s2228_s15  ;;  %v953_v30 = vsub.f32 %v2529_v51, %v952_v24 }
 0x26c   : > { %v954_v12 = vmul.f32 1.442695, %v953_v30  ;;  %v1966_v33 = vpop.eup %1965 }
 0x26d   : > { %v1030_v37 = vsel %vm761_vm2, %v1966_v33, 0.0 }
 0x26e   : > { %1967 = vpow2.f32 %v954_v12 }
 0x271   : > { %v1138_v29 = vpop.xlane.xlu0 %1137 }
 0x272   : > { %v1139_v31 = vsub.f32 %v1132_v55, %v1138_v29 }
 0x274   : > { %v1140_v34 = vmul.f32 1.442695, %v1139_v31  ;;  %v1968_v40 = vpop.eup %1967 }
 0x275   : > { %v956_v43 = vsel %vm761_vm2, %v1968_v40, 0.0 }
 0x276   : > { %1092 = vrot.lane.b32.xlu2 %v2497_v17, %s2225_s0  ;;  %1969 = vpow2.f32 %v1140_v34 }
 0x27c   : > { %v2567_v42 = vpop.eup %1969 }
 0x27d   : > { %1036 = vrot.lane.b32.xlu1 %v2497_v17, %s2226_s27  ;;  %v1142_v44 = vsel %vm761_vm2, %v2567_v42, 0.0 }
 0x281   : > { %v907_v25 = vpop.permute.xlu1 %906 }
 0x282   : > { %v912_v27 = vsel %vm798_vm3, %v907_v25, 0 }
 0x283   : > { %921 = vmatpush.bf16.msrb.mxu1 %v912_v27 }
 0x287   : > { %v1194_v32 = vpop.xlane.xlu0 %1193 }
 0x288   : > { %v1195_v35 = vsub.f32 %v1188_v60, %v1194_v32 }
 0x28a   : > { %v1196_v39 = vmul.f32 1.442695, %v1195_v35 }
 0x28c   : > { %1971 = vpow2.f32 %v1196_v39 }
 0x292   : > { %v1082_v36 = vpop.xlane.xlu2 %1081  ;;  %v2572_v45 = vpop.eup %1971 }
 0x293   : > { %v1083_v38 = vsub.f32 %v2536_v57, %v1082_v36  ;;  %v1198_v47 = vsel %vm761_vm2, %v2572_v45, 0.0 }
 0x294   : > { %1031 = vadd.xlane.f32.xlu0 %v1030_v37 }
 0x295   : > { %v1084_v41 = vmul.f32 1.442695, %v1083_v38 }
 0x297   : > { %1973 = vpow2.f32 %v1084_v41 }
 0x29c   : > { %957 = vadd.xlane.f32.xlu0 %v956_v43 }
 0x29d   : > { %v1974_v46 = vpop.eup %1973 }
 0x29e   : > { %v1086_v48 = vsel %vm761_vm2, %v1974_v46, 0.0 }
 0x29f   : > { %1143 = vadd.xlane.f32.xlu2 %v1142_v44 }
 0x2a4   : > { %1199 = vadd.xlane.f32.xlu0 %v1198_v47 }
 0x2a7   : > { %1087 = vadd.xlane.f32.xlu1 %v1086_v48  ;;  %v1827_v48 = vld [vmem:[%s2450_s12 + $0x8] sm:$0xff] }
 0x2a8   : > { %1270 = vmatpush.bf16.msra.mxu0 %v1827_v48 }
 0x2b8   : > { %1204 = vrot.lane.b32.xlu0 %v2497_v17, %s2228_s15 }
 0x2c0   : > { %1148 = vrot.lane.b32.xlu1 %v2497_v17, %s2227_s17 }
 0x2c9   : > { %v789_v49 = vpop.xlane.xlu0 %788 }
 0x2ca   : > { %1975 = vrcp.f32 %v789_v49  ;;  %v1826_v49 = vld [vmem:[%s2450_s12] sm:$0xff] }
 0x2cb   : > { %1271 = vmatpush.bf16.msra.mxu0 %v1826_v49 }
 0x2d0   : > { %v1976_v50 = vpop.eup %1975 }
 0x2d1   : > { %v902_v51 = vpop.xlane.xlu2 %901  ;;  %v791_v52 = vmul.f32 %v1976_v50, %v2543_v7 }
 0x2d2   : > { %1977 = vrcp.f32 %v902_v51 }
 0x2d3   : > { %v792_v53 = vpack.c.bf16 %v791_v52, %v791_v52 }
 0x2d5   : > { %1765 = vmatmul.msk.bf16.vlgmr.msra.gmra.mxu2 %vm761_vm2, %v792_v53 }
 0x2d7   : > { %v846_v54 = vpop.xlane.xlu1 %845 }
 0x2d8   : > { %v1978_v55 = vpop.eup %1977  ;;  %1979 = vrcp.f32 %v846_v54 }
 0x2d9   : > { %v904_v56 = vmul.f32 %v1978_v55, %v2549_v19  ;;  %v1093_v61 = vpop.permute.xlu2 %1092 }
 0x2da   : > { %v1098_v63 = vsel %vm798_vm3, %v1093_v61, 0 }
 0x2db   : > { %v905_v57 = vpack.c.bf16 %v904_v56, %v904_v56 }
 0x2dc   : > { %v963_v58 = vpop.permute.xlu0 %962 }
 0x2dd   : > { %v968_v59 = vsel %vm798_vm3, %v963_v58, 0  ;;  %1769 = vmatmul.msk.bf16.vlgmr.msrb.gmra.mxu1 %vm761_vm2, %v905_v57 }
 0x2de   : > { %v1980_v17 = vpop.eup %1979  ;;  %977 = vmatpush.bf16.msra.mxu2 %v968_v59 }
 0x2df   : > { %v848_v60 = vmul.f32 %v1980_v17, %v2553_v21 }
 0x2e1   : > { %v849_v62 = vpack.c.bf16 %v848_v60, %v848_v60 }
 0x2e5   : > { %1767 = vmatmul.msk.bf16.vlgmr.msrb.gmra.mxu2 %vm761_vm2, %v849_v62 }
 0x2e6   : > { %1107 = vmatpush.bf16.msrb.mxu2 %v1098_v63 }
 0x2ef   : > { %v1037_v0 = vpop.permute.xlu1 %1036 }
 0x2f0   : > { %v1042_v1 = vsel %vm798_vm3, %v1037_v0, 0 }
 0x2f1   : > { %1051 = vmatpush.bf16.msra.mxu1 %v1042_v1  ;;  %v1952_v1 = vld [vmem:[%s2737_s1] ss:$0 sm:$0xff] }
 0x307   : > { %v1032_v2 = vpop.xlane.xlu0 %1031 }
 0x308   : > { %1981 = vrcp.f32 %v1032_v2 }
 0x30e   : > { %v1982_v3 = vpop.eup %1981 }
 0x30f   : > { %v1034_v6 = vmul.f32 %v1982_v3, %v1966_v33  ;;  %v958_v7 = vpop.xlane.xlu0 %957 }
 0x310   : > { %1983 = vrcp.f32 %v958_v7 }
 0x311   : > { %v1035_v8 = vpack.c.bf16 %v1034_v6, %v1034_v6 }
 0x312   : > { %v1144_v16 = vpop.xlane.xlu2 %1143 }
 0x313   : > { %1773 = vmatmul.msk.bf16.vlgmr.msra.gmra.mxu1 %vm761_vm2, %v1035_v8 }
 0x316   : > { %v1984_v9 = vpop.eup %1983 }
 0x317   : > { %v960_v10 = vmul.f32 %v1984_v9, %v1968_v40  ;;  %v1200_v15 = vpop.xlane.xlu0 %1199 }
 0x319   : > { %v961_v11 = vpack.c.bf16 %v960_v10, %v960_v10 }
 0x31a   : > { %v1088_v13 = vpop.xlane.xlu1 %1087 }
 0x31b   : > { %1771 = vmatmul.msk.bf16.vlgmr.msra.gmra.mxu2 %vm761_vm2, %v961_v11  ;;  %1985 = vrcp.f32 %v1088_v13  ;;  %v2232_v13 = vmov 32.0  }
 0x31c   : > { %1987 = vrcp.f32 %v1144_v16 }
 0x31d   : > { %1989 = vrcp.f32 %v1200_v15 }
 0x31e   : > { %1991 = vrcp.f32 %v2232_v13 }
 0x321   : > { %v1986_v14 = vpop.eup %1985 }
 0x322   : > { %v1090_v18 = vmul.f32 %v1986_v14, %v1974_v46  ;;  %v1988_v22 = vpop.eup %1987 }
 0x323   : > { %v1146_v23 = vmul.f32 %v1988_v22, %v2567_v42  ;;  %v1990_v24 = vpop.eup %1989 }
 0x324   : > { %v1091_v19 = vpack.c.bf16 %v1090_v18, %v1090_v18  ;;  %v1202_v28 = vmul.f32 %v1990_v24, %v2572_v45  ;;  %v1992_v14 = vpop.eup %1991 }
 0x325   : > { %v1147_v27 = vpack.c.bf16 %v1146_v23, %v1146_v23  ;;  %v1287_v15 = vmul.f32 32.0, %v1992_v14  ;;  %vm1291_vm6 = vweird.f32 %v1992_v14 }
 0x326   : > { %v1203_v29 = vpack.c.bf16 %v1202_v28, %v1202_v28 }
 0x327   : > { %v1288_v16 = vsub.f32 1.0, %v1287_v15 }
 0x329   : > { %v1289_v18 = vmul.f32 %v1992_v14, %v1288_v16 }
 0x32a   : > { %v1205_v20 = vpop.permute.xlu0 %1204 }
 0x32b   : > { %v1210_v21 = vsel %vm798_vm3, %v1205_v20, 0  ;;  %1775 = vmatmul.msk.bf16.vlgmr.msrb.gmra.mxu2 %vm761_vm2, %v1091_v19  ;;  %v1290_v19 = vadd.f32 %v1992_v14, %v1289_v18 }
 0x32c   : > { %1219 = vmatpush.bf16.msra.mxu2 %v1210_v21 }
 0x332   : > { %v1149_v25 = vpop.permute.xlu1 %1148 }
 0x333   : > { %v1154_v26 = vsel %vm798_vm3, %v1149_v25, 0 }
 0x334   : > { %1163 = vmatpush.bf16.msrb.mxu1 %v1154_v26 }
 0x337   : > { %1777 = vmatmul.msk.bf16.vlgmr.msrb.gmra.mxu1 %vm761_vm2, %v1147_v27 }
 0x33b   : > { %1779 = vmatmul.msk.bf16.vlgmr.msra.gmra.mxu2 %vm761_vm2, %v1203_v29  ;;  %v1829_v29 = vld [vmem:[%s2459_s30 + $0x8] sm:$0xff] }
 0x33c   : > { %1373 = vmatpush.bf16.msra.mxu1 %v1829_v29 }
 0x358   : > { %v811_v30 = vpop.f32.mrf.mxu2 }
 0x35a   : > { %v923_v31 = vpop.f32.mrf.mxu1 }
 0x360   : > { %v813_v12 = vpop.f32.mrf.mxu2 }
 0x362   : > { %v925_v32 = vpop.f32.mrf.mxu1 }
 0x363   : > { %v1828_v32 = vld [vmem:[%s2459_s30] sm:$0xff]  ;;  %s2738_s30 = scalar_lea.vmem [#allocation8], %s2421_s2 }
 0x364   : > { %1374 = vmatpush.bf16.msra.mxu1 %v1828_v32  ;;  %v1953_v48 = vld [vmem:[%s2738_s30] ss:$0 sm:$0xff] }
 0x368   : > { %v867_v33 = vpop.f32.mrf.mxu2 }
 0x370   : > { %v869_v34 = vpop.f32.mrf.mxu2 }
 0x390   : > { %v1053_v35 = vpop.f32.mrf.mxu1 }
 0x398   : > { %v1055_v36 = vpop.f32.mrf.mxu1 }
 0x39e   : > { %v979_v37 = vpop.f32.mrf.mxu2 }
 0x3a6   : > { %v981_v38 = vpop.f32.mrf.mxu2 }
 0x3ae   : > { %v1109_v39 = vpop.f32.mrf.mxu2 }
 0x3af   : > { %v1941_v40 = vpack.i.bf16 %v1109_v39, %v867_v33 }
 0x3b1   : > { %1942 = vrot.lane.b32.xlu0 %v1941_v40, %s2229_s23 }
 0x3b4   : > { %v1165_v41 = vpop.f32.mrf.mxu1 }
 0x3b5   : > { %v1936_v42 = vpack.i.bf16 %v1165_v41, %v923_v31 }
 0x3b6   : > { %v1111_v43 = vpop.f32.mrf.mxu2 }
 0x3b7   : > { %1937 = vrot.lane.b32.xlu1 %v1936_v42, %s2230_s13 }
 0x3bc   : > { %v1167_v44 = vpop.f32.mrf.mxu1 }
 0x3be   : > { %v1221_v45 = vpop.f32.mrf.mxu2 }
 0x3bf   : > { %v1946_v46 = vpack.i.bf16 %v1221_v45, %v979_v37 }
 0x3c1   : > { %1947 = vrot.lane.b32.xlu0 %v1946_v46, %s2231_s21 }
 0x3c6   : > { %v1223_v47 = vpop.f32.mrf.mxu2 }
 0x423   : > { %v1943_v50 = vpop.permute.xlu0 %1942 }
 0x424   : > { %v1945_v52 = vunpack.i.h.bf16 %v1943_v50  ;;  %v1944_v53 = vunpack.i.l.bf16 %v1943_v50 }
 0x426   : > { %v1237_v57 = vsel %vm761_vm2, %v1053_v35, %v1945_v52  ;;  %v995_v58 = vsel %vm761_vm2, %v811_v30, %v1944_v53  ;;  %v1954_v52 = vld [vmem:[%s2739_s11] ss:$0 sm:$0xff] }
 0x429   : > { %v1938_v51 = vpop.permute.xlu1 %1937 }
 0x42a   : > { %v1940_v54 = vunpack.i.h.bf16 %v1938_v51  ;;  %v1939_v55 = vunpack.i.l.bf16 %v1938_v51 }
 0x42c   : > { %v997_v60 = vsel %vm996_vm4, %v995_v58, %v1939_v55  ;;  %v1238_v61 = vsel %vm996_vm4, %v1237_v57, %v1940_v54 }
 0x433   : > { %v1948_v56 = vpop.permute.xlu0 %1947 }
 0x434   : > { %v1950_v59 = vunpack.i.h.bf16 %v1948_v56  ;;  %v1949_v17 = vunpack.i.l.bf16 %v1948_v56 }
 0x436   : > { %v999_v62 = vsel %vm998_vm5, %v997_v60, %v1949_v17  ;;  %v1239_v63 = vsel %vm998_vm5, %v1238_v61, %v1950_v59  ;;  %v1833_v59 = vld [vmem:[%s2469_s16 + $0x18] sm:$0xff]  ;;  %v1832_v17 = vld [vmem:[%s2469_s16 + $0x10] sm:$0xff]  ;;  %v1831_v60 = vld [vmem:[%s2469_s16 + $0x8] sm:$0xff] }
 0x437   : > { %v1240_v0 = vpack.c.bf16 %v1239_v63, %v999_v62  ;;  %1428 = vmatpush.bf16.msra.mxu3 %v1833_v59  ;;  %v1830_v61 = vld [vmem:[%s2469_s16] sm:$0xff] }
 0x438   : > { %v1955_v63 = vld [vmem:[%s690_s22] ss:$0 sm:$0xff]  ;;  %s2742_s22 = scalar_lea.vmem [#allocation9], %s2421_s2 }
 0x439   : > { %1788 = vmatmul.msk.bf16.vlgmr.msra.gmra.mxu0 %vm736_vm1, %v1240_v0 }
 0x43b   : > { %1429 = vmatpush.bf16.msra.mxu3 %v1832_v17 }
 0x43f   : > { %1430 = vmatpush.bf16.msra.mxu3 %v1831_v60 }
 0x443   : > { %1431 = vmatpush.bf16.msra.mxu3 %v1830_v61 }
 0x4b6   : > { %v1273_v2 = vpop.f32.mrf.mxu0 }
 0x4b7   : > { %v1274_v3 = vadd.f32 %v1952_v1, %v1273_v2 }
 0x4b9   : > { %v1278_v6 = vadd.f32 %v1274_v3, %v2480_v4  ;;  %v2614_v4 = vsel %vm1291_vm6, %v1992_v14, %v1290_v19 }
 0x4bb   : > { %v1280_v7 = vsel %vm736_vm1, %v1278_v6, 0.0 }
 0x4bc   : > { %1281 = vadd.xlane.f32.xlu1 %v1280_v7 }
 0x4be   : > { %v1275_v8 = vpop.f32.mrf.mxu0 }
 0x4bf   : > { %v1276_v9 = vadd.f32 %v1952_v1, %v1275_v8  ;;  %v1956_v8 = vld [vmem:[%s698_s18] ss:$0 sm:$0xff] }
 0x4c1   : > { %v1279_v10 = vadd.f32 %v1276_v9, %v2482_v5 }
 0x4c3   : > { %v1283_v11 = vsel %vm736_vm1, %v1279_v10, 0.0 }
 0x4c4   : > { %1284 = vadd.xlane.f32.xlu2 %v1283_v11 }
 0x52f   : > { %v1282_v20 = vpop.xlane.xlu1 %1281 }
 0x530   : > { %v1293_v21 = vmul.f32 %v2614_v4, %v1282_v20 }
 0x532   : > { %v1295_v22 = vsub.f32 %v1278_v6, %v1293_v21 }
 0x534   : > { %v1297_v5 = vmul.f32 %v1295_v22, %v1295_v22 }
 0x536   : > { %v1299_v23 = vsel %vm736_vm1, %v1297_v5, 0.0 }
 0x537   : > { %v1285_v24 = vpop.xlane.xlu2 %1284  ;;  %1300 = vadd.xlane.f32.xlu0 %v1299_v23 }
 0x538   : > { %v1294_v25 = vmul.f32 %v2614_v4, %v1285_v24 }
 0x53a   : > { %v1296_v26 = vsub.f32 %v1279_v10, %v1294_v25 }
 0x53c   : > { %v1298_v27 = vmul.f32 %v1296_v26, %v1296_v26 }
 0x53e   : > { %v1302_v28 = vsel %vm736_vm1, %v1298_v27, 0.0 }
 0x53f   : > { %1303 = vadd.xlane.f32.xlu2 %v1302_v28 }
 0x5aa   : > { %v1301_v30 = vpop.xlane.xlu0 %1300 }
 0x5ab   : > { %v1305_v31 = vmul.f32 %v1301_v30, %v2614_v4 }
 0x5ad   : > { %v1307_v12 = vadd.f32 1e-05, %v1305_v31 }
 0x5af   : > { %1993 = vrsqrt.f32 %v1307_v12  ;;  %vm1315_vm8 = vweird.f32 %v1307_v12 }
 0x5b2   : > { %v1304_v33 = vpop.xlane.xlu2 %1303 }
 0x5b3   : > { %v1306_v34 = vmul.f32 %v1304_v33, %v2614_v4 }
 0x5b5   : > { %v1994_v35 = vpop.eup %1993  ;;  %v1308_v36 = vadd.f32 1e-05, %v1306_v34 }
 0x5b6   : > { %v1310_v37 = vmul.f32 %v1994_v35, %v1307_v12  ;;  %vm1316_vm7 = vweird.f32 %v1994_v35 }
 0x5b7   : > { %1995 = vrsqrt.f32 %v1308_v36  ;;  %vm1317_vm9 = vmor %vm1315_vm8, %vm1316_vm7  ;;  %vm1325_vm11 = vweird.f32 %v1308_v36 }
 0x5b8   : > { %v1311_v38 = vmul.f32 %v1994_v35, %v1310_v37 }
 0x5ba   : > { %v1312_v39 = vmul.f32 0.5, %v1311_v38 }
 0x5bc   : > { %v1313_v40 = vsub.f32 1.5, %v1312_v39 }
 0x5bd   : > { %v1996_v41 = vpop.eup %1995 }
 0x5be   : > { %v1314_v42 = vmul.f32 %v1994_v35, %v1313_v40  ;;  %v1320_v43 = vmul.f32 %v1996_v41, %v1308_v36  ;;  %vm1326_vm10 = vweird.f32 %v1996_v41 }
 0x5bf   : > { %vm1327_vm12 = vmor %vm1325_vm11, %vm1326_vm10 }
 0x5c0   : > { %v1321_v44 = vmul.f32 %v1996_v41, %v1320_v43  ;;  %v1318_v45 = vsel %vm1317_vm9, %v1994_v35, %v1314_v42 }
 0x5c1   : > { %v1329_v49 = vmul.f32 %v1318_v45, %v1295_v22 }
 0x5c2   : > { %v1322_v46 = vmul.f32 0.5, %v1321_v44 }
 0x5c3   : > { %v1335_v53 = vmul.f32 %v1953_v48, %v1329_v49 }
 0x5c4   : > { %v1323_v47 = vsub.f32 1.5, %v1322_v46 }
 0x5c5   : > { %v1341_v56 = vadd.f32 %v1954_v52, %v1335_v53 }
 0x5c6   : > { %v1324_v50 = vmul.f32 %v1996_v41, %v1323_v47 }
 0x5c8   : > { %v1328_v51 = vsel %vm1327_vm12, %v1996_v41, %v1324_v50  ;;  %v1957_v41 = vld [vmem:[%s2742_s22] ss:$0 sm:$0xff] }
 0x5c9   : > { %v1330_v54 = vmul.f32 %v1328_v51, %v1296_v26 }
 0x5cb   : > { %v1336_v55 = vmul.f32 %v1953_v48, %v1330_v54 }
 0x5cd   : > { %v1342_v57 = vadd.f32 %v1954_v52, %v1336_v55 }
 0x5cf   : > { %v1343_v58 = vpack.c.bf16 %v1342_v57, %v1341_v56 }
 0x5d1   : > { %1797 = vmatmul.msk.bf16.vlgmr.msra.gmra.mxu1 %vm736_vm1, %v1343_v58 }
 0x64e   : > { %v1376_v62 = vpop.f32.mrf.mxu1 }
 0x64f   : > { %v1377_v0 = vadd.f32 %v1955_v63, %v1376_v62 }
 0x651   : > { %v1381_v3 = vmax.f32 %v1377_v0, 0.0 }
 0x656   : > { %v1378_v1 = vpop.f32.mrf.mxu1 }
 0x657   : > { %v1379_v2 = vadd.f32 %v1955_v63, %v1378_v1 }
 0x659   : > { %v1382_v6 = vmax.f32 %v1379_v2, 0.0 }
 0x65b   : > { %v1383_v7 = vpack.c.bf16 %v1382_v6, %v1381_v3 }
 0x65d   : > { %1814 = vmatmul.msk.bf16.vlgmr.msra.gmra.mxu3 %vm1420_vm13, %v1383_v7 }
 0x6e0   : > { %v1433_v9 = vpop.f32.mrf.mxu3 }
 0x6e1   : > { %v1434_v10 = vadd.f32 %v1956_v8, %v1433_v9 }
 0x6e3   : > { %v1438_v11 = vadd.f32 %v1434_v10, %v1341_v56 }
 0x6e5   : > { %v1440_v13 = vsel %vm736_vm1, %v1438_v11, 0.0 }
 0x6e6   : > { %1441 = vadd.xlane.f32.xlu2 %v1440_v13 }
 0x6e8   : > { %v1435_v14 = vpop.f32.mrf.mxu3 }
 0x6e9   : > { %v1436_v15 = vadd.f32 %v1956_v8, %v1435_v14 }
 0x6eb   : > { %v1439_v16 = vadd.f32 %v1436_v15, %v1342_v57 }
 0x6ed   : > { %v1443_v18 = vsel %vm736_vm1, %v1439_v16, 0.0 }
 0x6ee   : > { %1444 = vadd.xlane.f32.xlu2 %v1443_v18 }
 0x759   : > { %v1442_v19 = vpop.xlane.xlu2 %1441 }
 0x75a   : > { %v1446_v20 = vmul.f32 %v1442_v19, %v2614_v4 }
 0x75c   : > { %v1448_v21 = vsub.f32 %v1438_v11, %v1446_v20 }
 0x75e   : > { %v1450_v22 = vmul.f32 %v1448_v21, %v1448_v21 }
 0x760   : > { %v1452_v5 = vsel %vm736_vm1, %v1450_v22, 0.0 }
 0x761   : > { %1453 = vadd.xlane.f32.xlu2 %v1452_v5  ;;  %v1445_v23 = vpop.xlane.xlu2 %1444 }
 0x762   : > { %v1447_v24 = vmul.f32 %v1445_v23, %v2614_v4 }
 0x764   : > { %v1449_v25 = vsub.f32 %v1439_v16, %v1447_v24 }
 0x766   : > { %v1451_v26 = vmul.f32 %v1449_v25, %v1449_v25 }
 0x768   : > { %v1455_v27 = vsel %vm736_vm1, %v1451_v26, 0.0 }
 0x769   : > { %1456 = vadd.xlane.f32.xlu1 %v1455_v27 }
 0x7d4   : > { %v1454_v28 = vpop.xlane.xlu2 %1453 }
 0x7d5   : > { %v1458_v29 = vmul.f32 %v1454_v28, %v2614_v4 }
 0x7d7   : > { %v1460_v30 = vadd.f32 1e-05, %v1458_v29 }
 0x7d9   : > { %1997 = vrsqrt.f32 %v1460_v30  ;;  %vm1468_vm15 = vweird.f32 %v1460_v30 }
 0x7dc   : > { %v1457_v31 = vpop.xlane.xlu1 %1456 }
 0x7dd   : > { %v1459_v12 = vmul.f32 %v1457_v31, %v2614_v4  ;;  %v1958_v4 = vld [vmem:[%s701_s8] ss:$0 sm:$0xff] }
 0x7df   : > { %v1998_v32 = vpop.eup %1997  ;;  %v1461_v33 = vadd.f32 1e-05, %v1459_v12 }
 0x7e0   : > { %v1463_v34 = vmul.f32 %v1998_v32, %v1460_v30  ;;  %vm1469_vm14 = vweird.f32 %v1998_v32 }
 0x7e1   : > { %1999 = vrsqrt.f32 %v1461_v33  ;;  %vm1470_vm0 = vmor %vm1468_vm15, %vm1469_vm14  ;;  %vm1478_vm3 = vweird.f32 %v1461_v33 }
 0x7e2   : > { %v1464_v35 = vmul.f32 %v1998_v32, %v1463_v34 }
 0x7e4   : > { %v1465_v36 = vmul.f32 0.5, %v1464_v35 }
 0x7e6   : > { %v1466_v37 = vsub.f32 1.5, %v1465_v36 }
 0x7e7   : > { %v2000_v38 = vpop.eup %1999 }
 0x7e8   : > { %v1467_v39 = vmul.f32 %v1998_v32, %v1466_v37  ;;  %v1473_v40 = vmul.f32 %v2000_v38, %v1461_v33  ;;  %vm1479_vm2 = vweird.f32 %v2000_v38 }
 0x7e9   : > { %vm1480_vm4 = vmor %vm1478_vm3, %vm1479_vm2 }
 0x7ea   : > { %v1471_v42 = vsel %vm1470_vm0, %v1998_v32, %v1467_v39  ;;  %v1474_v43 = vmul.f32 %v2000_v38, %v1473_v40 }
 0x7eb   : > { %v1482_v44 = vmul.f32 %v1471_v42, %v1448_v21 }
 0x7ec   : > { %v1475_v45 = vmul.f32 0.5, %v1474_v43 }
 0x7ed   : > { %v1488_v46 = vmul.f32 %v1957_v41, %v1482_v44 }
 0x7ee   : > { %v1476_v47 = vsub.f32 1.5, %v1475_v45 }
 0x7ef   : > { %v1494_v48 = vadd.f32 %v1958_v4, %v1488_v46 }
 0x7f0   : > { %v1477_v49 = vmul.f32 %v2000_v38, %v1476_v47 }
 0x7f1   : > { %1496 = vst.msk [vmem:[#allocation2] sm:$0xff] %vm736_vm1, %v1494_v48 }
 0x7f2   : > { %v1481_v50 = vsel %vm1480_vm4, %v2000_v38, %v1477_v49 }
 0x7f3   : > { %v1483_v51 = vmul.f32 %v1481_v50, %v1449_v25 }
 0x7f5   : > { %v1489_v52 = vmul.f32 %v1957_v41, %v1483_v51  ;;  %1501 = sbr.rel (%p1815_p3) target bundleno = 2063 (0x80f), region = 96 }
 0x7f7   : > { %v1495_v53 = vadd.f32 %v1958_v4, %v1489_v52 }
 0x7f9   : > { %1497 = vst.msk [vmem:[#allocation2 + $0x8] sm:$0xff] %vm736_vm1, %v1495_v53 }
 0x7fa   : > { %v1502_v54 = vsel %vm736_vm1, %v1494_v48, 0.0  ;;  %v1509_v55 = vsel %vm736_vm1, %v1495_v53, 0.0  ;;  %v2233_v57 = vmov 8.0   ;;  %vm1525_vm1 = vcmask 253952  }
 0x7fb   : > { %v1503_v56 = vrot.slane %v1502_v54, 4  ;;  %2001 = vrcp.f32 %v2233_v57  ;;  %v1510_v58 = vrot.slane %v1509_v55, 4 }
 0x7fd   : > { %v1504_v59 = vadd.f32 %v1503_v56, %v1502_v54  ;;  %v1511_v17 = vadd.f32 %v1510_v58, %v1509_v55 }
 0x7ff   : > { %v1505_v60 = vrot.slane %v1504_v59, 2  ;;  %v1512_v61 = vrot.slane %v1511_v17, 2 }
 0x801   : > { %v2002_v62 = vpop.eup %2001  ;;  %v1506_v63 = vadd.f32 %v1505_v60, %v1504_v59  ;;  %v1513_v0 = vadd.f32 %v1512_v61, %v1511_v17 }
 0x802   : > { %v1517_v1 = vmul.f32 8.0, %v2002_v62  ;;  %vm1521_vm5 = vweird.f32 %v2002_v62 }
 0x803   : > { %v1507_v2 = vrot.slane %v1506_v63, 1  ;;  %v1514_v3 = vrot.slane %v1513_v0, 1 }
 0x804   : > { %v1518_v6 = vsub.f32 1.0, %v1517_v1 }
 0x805   : > { %v1508_v8 = vadd.f32 %v1507_v2, %v1506_v63  ;;  %v1515_v9 = vadd.f32 %v1514_v3, %v1513_v0 }
 0x806   : > { %v1519_v7 = vmul.f32 %v2002_v62, %v1518_v6 }
 0x808   : > { %v1520_v10 = vadd.f32 %v2002_v62, %v1519_v7 }
 0x80a   : > { %v1522_v11 = vsel %vm1521_vm5, %v2002_v62, %v1520_v10 }
 0x80b   : > { %v1523_v13 = vmul.f32 %v1522_v11, %v1508_v8  ;;  %v1524_v14 = vmul.f32 %v1522_v11, %v1515_v9 }
 0x80d   : > { %1526 = vst.msk [vmem:[#allocation11] sm:$0x1] %vm1525_vm1, %v1523_v13 }
 0x80e   : > { %1527 = vst.msk [vmem:[#allocation11 + $0x1] sm:$0x1] %vm1525_vm1, %v1524_v14 }
 0x80f PF: > { %p1865_p4 = scmp.eq.s32.totalorder %s2371_s14, 1  ;;  %s2744_s19 = sld [smem:[#allocation30_spill]] }
 0x810   : > { %s2234_s15 = smov [#allocation11]   ;;  %s2235_s21 = smov 1  }
 0x811   : > { %s1535_s23 = sshll.u32 %s2234_s15, 4  ;;  %s1536_s23 = int_to_ptr.vmem [resolvable:$true] %s1535_s23 }
 0x815   : > { %s1537_s8 = sshll.u32 %s2744_s19, 4  ;;  %s1538_s8 = int_to_ptr.hbm [resolvable:$true] %s1537_s8 }
 0x816   : > { %1845 = dma.vmem_to_hbm [thread:$0]  (%p1865_p4), %s1536_s23, 32, %s1538_s8, [#allocation5], %s2230_s13, %s2230_s13, %s2235_s21  }
 0x817   : > { %2188 = dma.done.wait (%p1865_p4), [#allocation5], 32  }
 0x818   : > { %2190 = vsyncadd (%p1865_p4), [#allocation5], 4294967264 }
 0x819 PF: > { %s2745_s12 = sld [smem:[#allocation17_spill]]  ;;  %s2749_s25 = smov %s2197_s26 }
 0x81a   : > { %s2746_s14 = sld [smem:[#allocation16_spill]]  ;;  %s2751_s28 = smov %s2209_s29 }
 0x81b   : > { %s2747_s27 = sld [smem:[#allocation19_spill]] }
 0x81c   : > { %s2748_s24 = sld [smem:[#allocation18_spill]] }
 0x81f   : > { %s31_s30 = sadd.s32 1, %s2745_s12  }
 0x820   : > { %p28_p5 = scmp.ge.s32.totalorder %s31_s30, 4   ;;  %s2750_s26 = smov %s2746_s14 }
 0x822   : > { %s2752_s29 = smov %s2748_s24  ;;  %30 = sbr.rel (!%p28_p5) target bundleno = 20 (0x14), region = 175 }
 0x827   :  { %1554 = vsyncpa [#allocation4], 1 }
 0x828   :  { %1556 = vsyncpa [#allocation4 + $0x1], 1 }
 0x829   :  { %1557 = vsyncpa [#allocation7], 1 }
 0x82a   :  { %1559 = vsyncpa [#allocation7 + $0x1], 1 }
 0x82b   :  { %1560 = vsyncpa [#allocation10], 1 }
 0x82c   :  { %1562 = vsyncpa [#allocation10 + $0x1], 1 }
 0x82d   :  { %1563 = vsyncpa [#allocation5], 1 }
 0x82e   :  { %1565 = vsyncpa [#allocation5 + $0x1], 1 }

</bundles_post_ra>
